<compile_context>
chip_gen: v7x
topology: tpu7x:2x2x1
jax: 0.10.0
libtpu: 0.0.40
codegen_flags: <defaults>
</compile_context>

<pallas_src>
import functools
import math

import jax
import jax.numpy as jnp
from jax.experimental import pallas as pl
from jax.experimental.pallas import tpu as pltpu

BN_EPS = 1e-5
NEG_INF = -1e30


# ---------------------------------------------------------------------------
# Fused Pallas kernel
# ---------------------------------------------------------------------------
def _fused_gcn_kernel(adj_ref, x_ref, w_ref, b_ref, o_ref,
                      act0_ref, act1_ref, acc_ref, *,
                      tm, tk, apply_log_softmax):
    """grid = (num_layers, n_row_tiles, n_k_tiles); k is the reduction axis.

    Per layer l, row tile i (prev = x for l==0, else act[(l-1) & 1]):
      acc_i       = sum_k adj[i, k] @ prev[k]         (accumulated over k)
      z_i         = acc_i @ W'_l + b'_l               (epilogue on last k tile)
      act[l&1][i] = relu(z_i)                         (hidden layers)
      out[i]      = log_softmax(z_i)  or  z_i         (last layer)
    """
    l = pl.program_id(0)
    i = pl.program_id(1)
    k = pl.program_id(2)
    n_layers = pl.num_programs(0)
    nk = pl.num_programs(2)

    l_even = (l & 1) == 0
    l_odd = (l & 1) == 1

    @pl.when(k == 0)
    def _():
        acc_ref[...] = jnp.zeros_like(acc_ref)

    k_off = pl.multiple_of(k * tk, tk)

    # ---- acc += adj[i, k] @ prev[k]; prev = x / act0 / act1 per layer parity
    @pl.when(l == 0)
    def _():
        acc_ref[...] += jnp.dot(adj_ref[...], x_ref[pl.ds(k_off, tk), :],
                                preferred_element_type=jnp.float32)

    @pl.when(l_odd)                           # odd layers read act0 (written by even l-1)
    def _():
        acc_ref[...] += jnp.dot(adj_ref[...], act0_ref[pl.ds(k_off, tk), :],
                                preferred_element_type=jnp.float32)

    @pl.when((l > 0) & l_even)                # even layers > 0 read act1
    def _():
        acc_ref[...] += jnp.dot(adj_ref[...], act1_ref[pl.ds(k_off, tk), :],
                                preferred_element_type=jnp.float32)

    # ---- epilogue on the last k tile: folded W'/b', nonlinearity, store
    @pl.when(k == nk - 1)
    def _():
        z = jnp.dot(acc_ref[...].astype(w_ref.dtype), w_ref[0],
                    preferred_element_type=jnp.float32) + b_ref[0]
        row = pl.multiple_of(i * tm, tm)

        @pl.when(l < n_layers - 1)
        def _():
            a = jnp.maximum(z, 0.0)           # hidden layer: ReLU, keep in VMEM

            @pl.when(l_even)                  # even layers write act0
            def _():
                act0_ref[pl.ds(row, tm), :] = a.astype(act0_ref.dtype)

            @pl.when(l_odd)                   # odd layers write act1
            def _():
                act1_ref[pl.ds(row, tm), :] = a.astype(act1_ref.dtype)

        @pl.when(l == n_layers - 1)
        def _():
            if apply_log_softmax:
                # numerically-stable log-softmax over the lane dim;
                # padded lanes carry a folded bias of -1e30, so exp() == 0.
                mx = jnp.max(z, axis=-1, keepdims=True)
                s = z - mx
                lse = jnp.log(jnp.sum(jnp.exp(s), axis=-1, keepdims=True))
                o_ref[...] = (s - lse).astype(o_ref.dtype)
            else:
                o_ref[...] = z.astype(o_ref.dtype)


# ---------------------------------------------------------------------------
# Wrapper: BN folding, lane-dense padding, tiled fused pallas_call
# ---------------------------------------------------------------------------
def _round_up(v, m):
    return (v + m - 1) // m * m


def _nbytes(shape, dtype):
    return math.prod(shape) * jnp.dtype(dtype).itemsize


def gcn_forward(x, adj, convs, bns, *, matmul_dtype=jnp.float32, tm=128, tk=None,
                return_embeds=False):
    n, in_dim = x.shape
    num_layers = len(convs)
    out_dim = convs[-1][0].shape[1]

    # lane-dense feature padding (all layers share one padded width)
    f_pad = _round_up(max([in_dim] + [w.shape[1] for (w, _) in convs]), 128)
    n_pad = _round_up(n, tm)
    if tk is None:
        tk = 512 if n_pad % 512 == 0 else (256 if n_pad % 256 == 0 else 128)

    # ---- fold BatchNorm into conv weights/biases, pad to (f_pad, f_pad)
    ws, bs = [], []
    for layer in range(num_layers):
        w, b = convs[layer]
        if layer < num_layers - 1:
            gamma, beta, rm, rv = bns[layer]
            scale = gamma * jax.lax.rsqrt(rv + BN_EPS)
            w = w * scale[None, :]
            b = (b - rm) * scale + beta
        wp = jnp.zeros((f_pad, f_pad), jnp.float32).at[:w.shape[0], :w.shape[1]].set(w)
        bp = jnp.zeros((f_pad,), jnp.float32).at[:b.shape[0]].set(b)
        if (layer == num_layers - 1 and w.shape[1] < f_pad
                and not return_embeds):
            # mask padded logits out of the final log-softmax
            bp = bp.at[w.shape[1]:].set(NEG_INF)
        ws.append(wp)
        bs.append(bp)
    w_stack = jnp.stack(ws).astype(matmul_dtype)        # (L, f_pad, f_pad)
    b_stack = jnp.stack(bs)[:, None, :]                  # (L, 1, f_pad), f32

    x_pad = jnp.zeros((n_pad, f_pad), matmul_dtype).at[:n, :in_dim].set(
        x.astype(matmul_dtype))
    adj_pad = jnp.zeros((n_pad, n_pad), matmul_dtype).at[:n, :n].set(
        adj.astype(matmul_dtype))

    nb_i = n_pad // tm
    nb_k = n_pad // tk
    grid = (num_layers, nb_i, nb_k)

    # conservative VMEM budget (double-buffered inputs/outputs + scratch),
    # capped at 48 MiB so it is safe on v7x's 64 MiB physical VMEM.
    vmem_est = (2 * _nbytes((tm, tk), matmul_dtype)           # adj tiles
                + 2 * _nbytes((n_pad, f_pad), matmul_dtype)   # x (resident)
                + 2 * _nbytes((f_pad, f_pad), matmul_dtype)   # W'_l
                + 2 * _nbytes((1, f_pad), jnp.float32)        # b'_l
                + 2 * _nbytes((tm, f_pad), jnp.float32)       # out tiles
                + 2 * _nbytes((n_pad, f_pad), matmul_dtype)   # act ping-pong
                + _nbytes((tm, f_pad), jnp.float32))          # accumulator
    vmem_limit = min(max(2 * vmem_est, 32 * 1024 * 1024), 48 * 1024 * 1024)

    kernel = functools.partial(_fused_gcn_kernel, tm=tm, tk=tk,
                               apply_log_softmax=not return_embeds)

    out = pl.pallas_call(
        kernel,
        out_shape=jax.ShapeDtypeStruct((n_pad, f_pad), jnp.float32),
        grid_spec=pltpu.PrefetchScalarGridSpec(
            num_scalar_prefetch=0,
            grid=grid,
            in_specs=[
                pl.BlockSpec((tm, tk), lambda l, i, k: (i, k)),              # adj stream
                pl.BlockSpec((n_pad, f_pad), lambda l, i, k: (0, 0)),        # x resident
                pl.BlockSpec((1, f_pad, f_pad), lambda l, i, k: (l, 0, 0)),  # W'_l
                pl.BlockSpec((1, 1, f_pad), lambda l, i, k: (l, 0, 0)),      # b'_l
            ],
            out_specs=pl.BlockSpec((tm, f_pad), lambda l, i, k: (i, 0)),
            scratch_shapes=[
                pltpu.VMEM((n_pad, f_pad), matmul_dtype),   # act0 (even layers write)
                pltpu.VMEM((n_pad, f_pad), matmul_dtype),   # act1 (odd layers write)
                pltpu.VMEM((tm, f_pad), jnp.float32),       # f32 accumulator over k
            ],
        ),
        compiler_params=pltpu.CompilerParams(
            # Layer l+1 reads the whole layer-l activation held in per-core VMEM
            # scratch, so no grid axis may be megacore-parallel here.
            dimension_semantics=("arbitrary", "arbitrary", "arbitrary"),
            vmem_limit_bytes=int(vmem_limit),
        ),
    )(adj_pad, x_pad, w_stack, b_stack)

    return out[:n, :out_dim]


# ---------------------------------------------------------------------------
# Parameter setup + pure-JAX reference
# ---------------------------------------------------------------------------
def init_gcn_params(key, input_dim, hidden_dim, output_dim, num_layers):
    dims = [input_dim] + [hidden_dim] * (num_layers - 1) + [output_dim]
    convs, bns = [], []
    for i in range(num_layers):
        key, kw = jax.random.split(key)
        fan_in, fan_out = dims[i], dims[i + 1]
        scale = jnp.sqrt(6.0 / (fan_in + fan_out))  # glorot-uniform like PyG
        w = jax.random.uniform(kw, (fan_in, fan_out), jnp.float32, -scale, scale)
        b = jnp.zeros((fan_out,), jnp.float32)
        convs.append((w, b))
    for i in range(num_layers - 1):
        key, km, kv = jax.random.split(key, 3)
        gamma = jnp.ones((hidden_dim,), jnp.float32)
        beta = jnp.zeros((hidden_dim,), jnp.float32)
        # deterministic, non-trivial running stats so the BN math is exercised
        run_mean = 0.1 * jax.random.normal(km, (hidden_dim,), jnp.float32)
        run_var = 1.0 + 0.1 * jax.random.uniform(kv, (hidden_dim,), jnp.float32)
        bns.append((gamma, beta, run_mean, run_var))
    return convs, bns


def gcn_reference(x, adj, convs, bns, return_embeds=False):
    """Pure-JAX reference (eval-mode BN, identity dropout)."""
    for layer in range(len(convs) - 1):
        w, b = convs[layer]
        gamma, beta, rm, rv = bns[layer]
        m = adj @ (x @ w) + b
        y = (m - rm) / jnp.sqrt(rv + BN_EPS) * gamma + beta
        x = jnp.maximum(y, 0.0)
    w, b = convs[-1]
    m = adj @ (x @ w) + b
    if return_embeds:
        return m
    return jax.nn.log_softmax(m, axis=-1)


def make_normalized_adj(key, n):
    a = (jax.random.uniform(key, (n, n)) < 0.1).astype(jnp.float32)
    a = jnp.maximum(a, a.T)                      # symmetrize
    a = a + jnp.eye(n, dtype=jnp.float32)        # self loops
    deg = jnp.sum(a, axis=1)
    d_inv_sqrt = 1.0 / jnp.sqrt(deg)
    return a * d_inv_sqrt[:, None] * d_inv_sqrt[None, :]


if __name__ == "__main__":
    key = jax.random.PRNGKey(0)
    k_x, k_adj, k_p = jax.random.split(key, 3)

    N, input_dim, hidden_dim, output_dim, num_layers = 64, 16, 32, 8, 3

    x = jax.random.normal(k_x, (N, input_dim), jnp.float32)
    adj = make_normalized_adj(k_adj, N)
    convs, bns = init_gcn_params(k_p, input_dim, hidden_dim, output_dim, num_layers)

    ref = gcn_reference(x, adj, convs, bns)

    # f32 MXU path (tight correctness gate)
    out = gcn_forward(x, adj, convs, bns)
    out = jax.block_until_ready(out)
    assert out.shape == (N, output_dim)
    assert jnp.allclose(out, ref, atol=1e-3, rtol=1e-3), "f32 kernel mismatch vs JAX reference"

    # return_embeds=True path (skip final log_softmax)
    emb_ref = gcn_reference(x, adj, convs, bns, return_embeds=True)
    emb = jax.block_until_ready(gcn_forward(x, adj, convs, bns, return_embeds=True))
    assert emb.shape == (N, output_dim)
    assert jnp.allclose(emb, emb_ref, atol=1e-3, rtol=1e-3), "return_embeds mismatch"

    # bf16 MXU inputs with f32 accumulation (halves the streamed adj bytes)
    out_bf16 = gcn_forward(x, adj, convs, bns, matmul_dtype=jnp.bfloat16)
    out_bf16 = jax.block_until_ready(out_bf16)
    assert out_bf16.shape == (N, output_dim)
    assert jnp.allclose(out_bf16, ref, atol=0.25, rtol=0.05), "bf16 kernel sanity check failed"

    print("KERNEL_OK")
</pallas_src>

<mosaic_0001>
module attributes {stable_mosaic.version = 11 : i64} {
  func.func @_fused_gcn_kernel(%arg0: i32, %arg1: i32, %arg2: i32, %arg3: memref<128x128xf32, #tpu.memory_space<vmem>>, %arg4: memref<128x128xf32, #tpu.memory_space<vmem>>, %arg5: memref<1x128x128xf32, #tpu.memory_space<vmem>>, %arg6: memref<1x1x128xf32, #tpu.memory_space<vmem>>, %arg7: memref<128x128xf32, #tpu.memory_space<vmem>>, %arg8: memref<128x128xf32, #tpu.memory_space<vmem>>, %arg9: memref<128x128xf32, #tpu.memory_space<vmem>>, %arg10: memref<128x128xf32, #tpu.memory_space<vmem>>) attributes {dimension_semantics = [#tpu.dimension_semantics<arbitrary>, #tpu.dimension_semantics<arbitrary>, #tpu.dimension_semantics<arbitrary>], iteration_bounds = array<i64: 3, 1, 1>, scalar_prefetch = 0 : i64, scratch_operands = 3 : i64, tpu.core_type = #tpu.core_type<tc>, window_params = [{transform_indices = @transform_0, window_bounds = array<i64: 128, 128>}, {pipeline_mode = #tpu.pipeline_mode<synchronous>, transform_indices = @transform_1, window_bounds = array<i64: 128, 128>}, {transform_indices = @transform_2, window_bounds = array<i64: 1, 128, 128>}, {transform_indices = @transform_3, window_bounds = array<i64: 1, 1, 128>}, {transform_indices = @transform_4, window_bounds = array<i64: 128, 128>}]} {
    %c1_i32 = arith.constant 1 : i32
    %0 = arith.andi %arg0, %c1_i32 : i32
    %c0_i32 = arith.constant 0 : i32
    %1 = arith.cmpi eq, %0, %c0_i32 : i32
    %c1_i32_0 = arith.constant 1 : i32
    %2 = arith.andi %arg0, %c1_i32_0 : i32
    %c1_i32_1 = arith.constant 1 : i32
    %3 = arith.cmpi eq, %2, %c1_i32_1 : i32
    %c0_i32_2 = arith.constant 0 : i32
    %4 = arith.cmpi eq, %arg2, %c0_i32_2 : i32
    %5 = arith.extui %4 : i1 to i32
    %c0_i32_3 = arith.constant 0 : i32
    %6 = arith.cmpi ne, %5, %c0_i32_3 : i32
    scf.if %6 {
      %cst = arith.constant 0.000000e+00 : f32
      %21 = vector.broadcast %cst : f32 to vector<128x128xf32>
      %c0 = arith.constant 0 : index
      %c0_11 = arith.constant 0 : index
      %22 = vector.load %arg10[%c0, %c0_11] : memref<128x128xf32, #tpu.memory_space<vmem>>, vector<128x128xf32>
      tpu.vector_store %arg10[%c0, %c0_11], %21 {strides = array<i32>} : memref<128x128xf32, #tpu.memory_space<vmem>>, vector<128x128xf32>,
    } else {
    }
    %c128_i32 = arith.constant 128 : i32
    %7 = arith.muli %arg2, %c128_i32 : i32
    %8 = tpu.assume_multiple %7, 128 : i32
    %c0_i32_4 = arith.constant 0 : i32
    %9 = arith.cmpi eq, %arg0, %c0_i32_4 : i32
    %10 = arith.extui %9 : i1 to i32
    %c0_i32_5 = arith.constant 0 : i32
    %11 = arith.cmpi ne, %10, %c0_i32_5 : i32
    scf.if %11 {
      %c0 = arith.constant 0 : index
      %c0_11 = arith.constant 0 : index
      %21 = vector.load %arg10[%c0, %c0_11] : memref<128x128xf32, #tpu.memory_space<vmem>>, vector<128x128xf32>
      %c0_12 = arith.constant 0 : index
      %c0_13 = arith.constant 0 : index
      %22 = vector.load %arg3[%c0_12, %c0_13] : memref<128x128xf32, #tpu.memory_space<vmem>>, vector<128x128xf32>
      %23 = arith.index_cast %8 : i32 to index
      %c0_14 = arith.constant 0 : index
      %24 = vector.load %arg4[%23, %c0_14] : memref<128x128xf32, #tpu.memory_space<vmem>>, vector<128x128xf32>
      %cst = arith.constant dense<0.000000e+00> : vector<128x128xf32>
      %25 = tpu.matmul %22, %24, %cst {dimension_numbers = #tpu.dot_dimension_numbers<[1], [0], [0], [1], [0, 0, 1, 1], [], []>} : vector<128x128xf32>, vector<128x128xf32>, vector<128x128xf32> -> vector<128x128xf32>
      %26 = arith.addf %21, %25 : vector<128x128xf32>
      %c0_15 = arith.constant 0 : index
      %c0_16 = arith.constant 0 : index
      %27 = vector.load %arg10[%c0_15, %c0_16] : memref<128x128xf32, #tpu.memory_space<vmem>>, vector<128x128xf32>
      tpu.vector_store %arg10[%c0_15, %c0_16], %26 {strides = array<i32>} : memref<128x128xf32, #tpu.memory_space<vmem>>, vector<128x128xf32>,
    } else {
    }
    %12 = arith.extui %3 : i1 to i32
    %c0_i32_6 = arith.constant 0 : i32
    %13 = arith.cmpi ne, %12, %c0_i32_6 : i32
    scf.if %13 {
      %c0 = arith.constant 0 : index
      %c0_11 = arith.constant 0 : index
      %21 = vector.load %arg10[%c0, %c0_11] : memref<128x128xf32, #tpu.memory_space<vmem>>, vector<128x128xf32>
      %c0_12 = arith.constant 0 : index
      %c0_13 = arith.constant 0 : index
      %22 = vector.load %arg3[%c0_12, %c0_13] : memref<128x128xf32, #tpu.memory_space<vmem>>, vector<128x128xf32>
      %23 = arith.index_cast %8 : i32 to index
      %c0_14 = arith.constant 0 : index
      %24 = vector.load %arg8[%23, %c0_14] : memref<128x128xf32, #tpu.memory_space<vmem>>, vector<128x128xf32>
      %cst = arith.constant dense<0.000000e+00> : vector<128x128xf32>
      %25 = tpu.matmul %22, %24, %cst {dimension_numbers = #tpu.dot_dimension_numbers<[1], [0], [0], [1], [0, 0, 1, 1], [], []>} : vector<128x128xf32>, vector<128x128xf32>, vector<128x128xf32> -> vector<128x128xf32>
      %26 = arith.addf %21, %25 : vector<128x128xf32>
      %c0_15 = arith.constant 0 : index
      %c0_16 = arith.constant 0 : index
      %27 = vector.load %arg10[%c0_15, %c0_16] : memref<128x128xf32, #tpu.memory_space<vmem>>, vector<128x128xf32>
      tpu.vector_store %arg10[%c0_15, %c0_16], %26 {strides = array<i32>} : memref<128x128xf32, #tpu.memory_space<vmem>>, vector<128x128xf32>,
    } else {
    }
    %c0_i32_7 = arith.constant 0 : i32
    %14 = arith.cmpi sgt, %arg0, %c0_i32_7 : i32
    %15 = arith.andi %14, %1 : i1
    %16 = arith.extui %15 : i1 to i32
    %c0_i32_8 = arith.constant 0 : i32
    %17 = arith.cmpi ne, %16, %c0_i32_8 : i32
    scf.if %17 {
      %c0 = arith.constant 0 : index
      %c0_11 = arith.constant 0 : index
      %21 = vector.load %arg10[%c0, %c0_11] : memref<128x128xf32, #tpu.memory_space<vmem>>, vector<128x128xf32>
      %c0_12 = arith.constant 0 : index
      %c0_13 = arith.constant 0 : index
      %22 = vector.load %arg3[%c0_12, %c0_13] : memref<128x128xf32, #tpu.memory_space<vmem>>, vector<128x128xf32>
      %23 = arith.index_cast %8 : i32 to index
      %c0_14 = arith.constant 0 : index
      %24 = vector.load %arg9[%23, %c0_14] : memref<128x128xf32, #tpu.memory_space<vmem>>, vector<128x128xf32>
      %cst = arith.constant dense<0.000000e+00> : vector<128x128xf32>
      %25 = tpu.matmul %22, %24, %cst {dimension_numbers = #tpu.dot_dimension_numbers<[1], [0], [0], [1], [0, 0, 1, 1], [], []>} : vector<128x128xf32>, vector<128x128xf32>, vector<128x128xf32> -> vector<128x128xf32>
      %26 = arith.addf %21, %25 : vector<128x128xf32>
      %c0_15 = arith.constant 0 : index
      %c0_16 = arith.constant 0 : index
      %27 = vector.load %arg10[%c0_15, %c0_16] : memref<128x128xf32, #tpu.memory_space<vmem>>, vector<128x128xf32>
      tpu.vector_store %arg10[%c0_15, %c0_16], %26 {strides = array<i32>} : memref<128x128xf32, #tpu.memory_space<vmem>>, vector<128x128xf32>,
    } else {
    }
    %c0_i32_9 = arith.constant 0 : i32
    %18 = arith.cmpi eq, %arg2, %c0_i32_9 : i32
    %19 = arith.extui %18 : i1 to i32
    %c0_i32_10 = arith.constant 0 : i32
    %20 = arith.cmpi ne, %19, %c0_i32_10 : i32
    scf.if %20 {
      %c0 = arith.constant 0 : index
      %c0_11 = arith.constant 0 : index
      %21 = vector.load %arg10[%c0, %c0_11] : memref<128x128xf32, #tpu.memory_space<vmem>>, vector<128x128xf32>
      %c0_12 = arith.constant 0 : index
      %c0_13 = arith.constant 0 : index
      %c0_14 = arith.constant 0 : index
      %22 = vector.load %arg5[%c0_12, %c0_13, %c0_14] : memref<1x128x128xf32, #tpu.memory_space<vmem>>, vector<1x128x128xf32>
      %23 = vector.shape_cast %22 : vector<1x128x128xf32> to vector<128x128xf32>
      %cst = arith.constant dense<0.000000e+00> : vector<128x128xf32>
      %24 = tpu.matmul %21, %23, %cst {dimension_numbers = #tpu.dot_dimension_numbers<[1], [0], [0], [1], [0, 0, 1, 1], [], []>} : vector<128x128xf32>, vector<128x128xf32>, vector<128x128xf32> -> vector<128x128xf32>
      %c0_15 = arith.constant 0 : index
      %c0_16 = arith.constant 0 : index
      %c0_17 = arith.constant 0 : index
      %25 = vector.load %arg6[%c0_15, %c0_16, %c0_17] : memref<1x1x128xf32, #tpu.memory_space<vmem>>, vector<1x1x128xf32>
      %26 = vector.shape_cast %25 : vector<1x1x128xf32> to vector<1x128xf32>
      %27 = vector.broadcast %26 : vector<1x128xf32> to vector<128x128xf32>
      %28 = arith.addf %24, %27 : vector<128x128xf32>
      %c128_i32_18 = arith.constant 128 : i32
      %29 = arith.muli %arg1, %c128_i32_18 : i32
      %30 = tpu.assume_multiple %29, 128 : i32
      %c2_i32 = arith.constant 2 : i32
      %31 = arith.cmpi slt, %arg0, %c2_i32 : i32
      %32 = arith.extui %31 : i1 to i32
      %c0_i32_19 = arith.constant 0 : i32
      %33 = arith.cmpi ne, %32, %c0_i32_19 : i32
      scf.if %33 {
        %cst_22 = arith.constant 0.000000e+00 : f32
        %37 = vector.broadcast %cst_22 : f32 to vector<128x128xf32>
        %38 = arith.maximumf %28, %37 : vector<128x128xf32>
        %39 = arith.extui %1 : i1 to i32
        %c0_i32_23 = arith.constant 0 : i32
        %40 = arith.cmpi ne, %39, %c0_i32_23 : i32
        scf.if %40 {
          %43 = arith.index_cast %30 : i32 to index
          %c0_25 = arith.constant 0 : index
          %44 = vector.load %arg8[%43, %c0_25] : memref<128x128xf32, #tpu.memory_space<vmem>>, vector<128x128xf32>
          tpu.vector_store %arg8[%43, %c0_25], %38 {strides = array<i32>} : memref<128x128xf32, #tpu.memory_space<vmem>>, vector<128x128xf32>,
        } else {
        }
        %41 = arith.extui %3 : i1 to i32
        %c0_i32_24 = arith.constant 0 : i32
        %42 = arith.cmpi ne, %41, %c0_i32_24 : i32
        scf.if %42 {
          %43 = arith.index_cast %30 : i32 to index
          %c0_25 = arith.constant 0 : index
          %44 = vector.load %arg9[%43, %c0_25] : memref<128x128xf32, #tpu.memory_space<vmem>>, vector<128x128xf32>
          tpu.vector_store %arg9[%43, %c0_25], %38 {strides = array<i32>} : memref<128x128xf32, #tpu.memory_space<vmem>>, vector<128x128xf32>,
        } else {
        }
      } else {
      }
      %c2_i32_20 = arith.constant 2 : i32
      %34 = arith.cmpi eq, %arg0, %c2_i32_20 : i32
      %35 = arith.extui %34 : i1 to i32
      %c0_i32_21 = arith.constant 0 : i32
      %36 = arith.cmpi ne, %35, %c0_i32_21 : i32
      scf.if %36 {
        %cst_22 = arith.constant dense<0xFF800000> : vector<128xf32>
        %37 = vector.multi_reduction <maximumf>, %28, %cst_22 [1] : vector<128x128xf32> to vector<128xf32>
        %38 = vector.shape_cast %37 : vector<128xf32> to vector<128x1xf32>
        %39 = vector.broadcast %38 : vector<128x1xf32> to vector<128x128xf32>
        %40 = arith.subf %28, %39 : vector<128x128xf32>
        %41 = math.exp %40 : vector<128x128xf32>
        %cst_23 = arith.constant dense<0.000000e+00> : vector<128xf32>
        %42 = vector.multi_reduction <add>, %41, %cst_23 [1] : vector<128x128xf32> to vector<128xf32>
        %43 = vector.shape_cast %42 : vector<128xf32> to vector<128x1xf32>
        %44 = math.log %43 : vector<128x1xf32>
        %45 = vector.broadcast %44 : vector<128x1xf32> to vector<128x128xf32>
        %46 = arith.subf %40, %45 : vector<128x128xf32>
        %c0_24 = arith.constant 0 : index
        %c0_25 = arith.constant 0 : index
        %47 = vector.load %arg7[%c0_24, %c0_25] : memref<128x128xf32, #tpu.memory_space<vmem>>, vector<128x128xf32>
        tpu.vector_store %arg7[%c0_24, %c0_25], %46 {strides = array<i32>} : memref<128x128xf32, #tpu.memory_space<vmem>>, vector<128x128xf32>,
      } else {
      }
    } else {
    }
    return
  }
  func.func @transform_0(%arg0: i32, %arg1: i32, %arg2: i32) -> (i32, i32) {
    %c0_i32 = arith.constant 0 : i32
    return %arg1, %arg2 : i32, i32
  }
  func.func @transform_1(%arg0: i32, %arg1: i32, %arg2: i32) -> (i32, i32) {
    %c0_i32 = arith.constant 0 : i32
    %c0_i32_0 = arith.constant 0 : i32
    %c0_i32_1 = arith.constant 0 : i32
    return %c0_i32, %c0_i32_0 : i32, i32
  }
  func.func @transform_2(%arg0: i32, %arg1: i32, %arg2: i32) -> (i32, i32, i32) {
    %c0_i32 = arith.constant 0 : i32
    %c0_i32_0 = arith.constant 0 : i32
    %c0_i32_1 = arith.constant 0 : i32
    return %arg0, %c0_i32, %c0_i32_0 : i32, i32, i32
  }
  func.func @transform_3(%arg0: i32, %arg1: i32, %arg2: i32) -> (i32, i32, i32) {
    %c0_i32 = arith.constant 0 : i32
    %c0_i32_0 = arith.constant 0 : i32
    %c0_i32_1 = arith.constant 0 : i32
    return %arg0, %c0_i32, %c0_i32_0 : i32, i32, i32
  }
  func.func @transform_4(%arg0: i32, %arg1: i32, %arg2: i32) -> (i32, i32) {
    %c0_i32 = arith.constant 0 : i32
    %c0_i32_0 = arith.constant 0 : i32
    return %arg1, %c0_i32 : i32, i32
  }
}

</mosaic_0001>

<bundles_post_ra>
// kernel: tpu_custom_call.1
= control target key start
LH: loop header
LB: loop body
LE: loop exit
PB: predicated region body
PF: predicated region fallthrough
CT: control target
= control target key end

     0   :  { %9 = vsyncpa [#allocation6], 0  ;;  %s2881_s0 = inlined_call_operand.hbm [shape: f32[128,128], index: 0, kind: input, shape index: {}]   ;;  %s2882_s1 = inlined_call_operand.hbm [shape: f32[128,128], index: 1, kind: input, shape index: {}]   ;;  %s2883_s2 = inlined_call_operand.hbm [shape: f32[3,128,128], index: 2, kind: input, shape index: {}]   ;;  %s2884_s3 = inlined_call_operand.vmem [shape: f32[3,1,128], index: 3, kind: input, shape index: {}]   ;;  %s2885_s4 = inlined_call_operand.hbm [shape: f32[128,128], index: 4, kind: output, shape index: {}]  }
   0x1   :  { %10 = vsyncpa [#allocation9], 0 }
   0x2   :  { %11 = vsyncpa [#allocation7], 0  ;;  %s2472_s15 = smov 0   ;;  %s2474_s16 = smov 0  }
   0x3   :  { %s2476_s17 = smov 0   ;;  %s2478_s18 = smov 0  }
   0x4   :  { %s2480_s19 = smov 0   ;;  %s2482_s20 = smov 0  }
   0x5 LB: > { %s2501_s21 = sadd.s32 4294967295, %s2436_s20   ;;  %p99_p0 = scmp.ne.s32.totalorder %s2424_s17, %s2420_s16  ;;  %s2436_s20 = sphi %s2482_s20, %s17_s20   ;;  %s2432_s19 = sphi %s2480_s19, %s2905_s19   ;;  %s2428_s18 = sphi %s2478_s18, %s2904_s18   ;;  %s2424_s17 = sphi %s2476_s17, %s2903_s17   ;;  %s2420_s16 = sphi %s2474_s16, %s2902_s16   ;;  %s2416_s15 = sphi %s2472_s15, %s2901_s15  }
   0x6   : > { %p100_p1 = scmp.eq.s32.totalorder %s2436_s20, 0  ;;  %p105_p2 = scmp.ne.s32.totalorder %s2420_s16, %s2416_s15 }
   0x7   : > { %p2886_p3 = scmp.eq.s32.totalorder %s2501_s21, 0  ;;  %p1543_p4 = scmp.ge.s32.totalorder %s2436_s20, 1 }
   0x8   : > { %p101_p5 = por %p100_p1, %p99_p0  ;;  %p168_p6 = scmp.lt.s32.totalorder %s2436_s20, 4 }
   0x9   : > { %p2512_p7 = por %p2886_p3, %p105_p2  ;;  %s2438_s24 = smov [#allocation5]  }
   0xa   : > { %p2516_p8 = pnand %p1543_p4, %p168_p6  ;;  %s184_s25 = sshll.u32 %s2438_s24, 4  ;;  %s185_s25 = int_to_ptr.vmem [resolvable:$true] %s184_s25 }
   0xb   : > { %s2890_s22 = scalar_select %p2512_p7, 1, 0 }
   0xc   : > { %s2891_s23 = scalar_select %p2516_p8, 1, 0 }
   0xd   : > { %p2124_p9 = pneg %p2516_p8  ;;  %p2137_p11 = scmp.lt.s32.totalorder %s2436_s20, 3 }
   0xe   : > { %s2262_s30 = scalar_lea.hbm %s2881_s0, 2048 }
   0xf   : > { %p2524_p10 = pnand %p2124_p9, %p2886_p3  ;;  %p2529_p12 = pnand %p2137_p11, %p101_p5 }
  0x10   : > { %p2263_p13 = scmp.ne.s32.totalorder %s2881_s0, %s2262_s30  ;;  %p2269_p4 = scmp.lt.u32.totalorder %s2262_s30, %s2881_s0 }
  0x11   : > { %s2893_s27 = scalar_select %p2529_p12, 1, 0 }
  0x12   : > { %p2264_p0 = pneg %p2524_p10 }
  0x14   : > { %p2265_p1 = pnand %p2264_p0, %p2263_p13 }
  0x16   : > { %p2266_p2 = pneg %p2265_p1 }
  0x18   : > { %p2271_p5 = pnand %p2269_p4, %p2266_p2 }
  0x1a   : > { %2274 = shalt.err (!%p2271_p5)
}
  0x1b   : > { %s2275_s9 = scalar_lea.vmem %s185_s25, 2048  ;;  %p2283_p3 = scmp.lt.s32.totalorder %s185_s25, %s185_s25 }
  0x1c   : > { %p2276_p6 = scmp.ne.s32.totalorder %s185_s25, %s2275_s9  ;;  %p2284_p7 = scmp.lt.s32.totalorder %s2275_s9, %s2275_s9 }
  0x1e   : > { %p2278_p9 = pnand %p2276_p6, %p2264_p0  ;;  %p2285_p8 = por %p2284_p7, %p2283_p3 }
  0x20   : > { %p2279_p11 = pneg %p2278_p9 }
  0x22   : > { %p2286_p12 = pnand %p2285_p8, %p2279_p11 }
  0x24   : > { %2289 = shalt.err (!%p2286_p12)
}
  0x25   : > { %s2439_s10 = smov 128   ;;  %s2440_s11 = smov 8  }
  0x26   : > { %2127 = dma.hbm_to_vmem [thread:$0]  (!%p2524_p10), %s2881_s0, 2048, %s185_s25, [#allocation6], %s2439_s10, %s2439_s10, %s2440_s11  }
  0x27   : > { %s2441_s14 = smov [#allocation8]   ;;  %s2290_s29 = scalar_lea.hbm %s2882_s1, 2048 }
  0x28   : > { %s197_s15 = sshll.u32 %s2441_s14, 4  ;;  %p2291_p3 = scmp.ne.s32.totalorder %s2882_s1, %s2290_s29  ;;  %s198_s15 = int_to_ptr.vmem [resolvable:$true] %s197_s15 }
  0x29   : > { %p2297_p12 = scmp.lt.u32.totalorder %s2290_s29, %s2882_s1 }
  0x2a   : > { %p2293_p7 = pnand %p2291_p3, %p2264_p0 }
  0x2c   : > { %p2294_p8 = pneg %p2293_p7 }
  0x2e   : > { %p2299_p13 = pnand %p2297_p12, %p2294_p8 }
  0x30   : > { %2302 = shalt.err (!%p2299_p13)
}
  0x31   : > { %s2303_s25 = scalar_lea.vmem %s198_s15, 2048  ;;  %p2311_p5 = scmp.lt.s32.totalorder %s198_s15, %s198_s15 }
  0x32   : > { %p2304_p1 = scmp.ne.s32.totalorder %s198_s15, %s2303_s25  ;;  %p2312_p6 = scmp.lt.s32.totalorder %s2303_s25, %s2303_s25 }
  0x34   : > { %p2306_p2 = pnand %p2304_p1, %p2264_p0  ;;  %p2313_p9 = por %p2312_p6, %p2311_p5 }
  0x36   : > { %p2307_p4 = pneg %p2306_p2 }
  0x38   : > { %p2314_p11 = pnand %p2313_p9, %p2307_p4 }
  0x3a   : > { %2317 = shalt.err (!%p2314_p11)
}
  0x3b   : > { %2130 = dma.hbm_to_vmem [thread:$0]  (!%p2524_p10), %s2882_s1, 2048, %s198_s15, [#allocation9], %s2439_s10, %s2439_s10, %s2440_s11  }
  0x3c   : > { %s36_s12 = sadd.s32 1, %s2432_s19  ;;  %s92_s13 = sadd.s32 1, %s2424_s17 }
  0x3d   : > { %p38_p0 = scmp.ge.s32.totalorder %s36_s12, 3  ;;  %s211_s14 = sand.u32 1, %s2436_s20  }
  0x3e   : > { %s213_s26 = sand.u32 1, %s2424_s17   ;;  %s1565_s28 = sshll.u32 %s2432_s19, 11 }
  0x3f   : > { %s2907_s12 = smov (%p38_p0, %s36_s12), 0  ;;  %s1547_s24 = sshll.u32 %s213_s26, 7 }
  0x40   : > { %s89_s29 = ssub.s32 %s2432_s19, %s2907_s12  ;;  %s2593_s6 = scalar_lea.hbm %s2883_s2, %s1565_s28 }
  0x41   : > { %p90_p3 = scmp.eq.s32.totalorder %s89_s29, 0  ;;  %s215_s15 = scalar_lea.vmem [#allocation10], %s1547_s24 }
  0x42   : > { %s222_s7 = sshll.u32 %s215_s15, 4  ;;  %s2600_s8 = scalar_lea.sflag [#allocation6], %s211_s14  ;;  %s2598_s7 = int_to_ptr.vmem [resolvable:$true] %s222_s7 }
  0x43   : > { %s2596_s25 = scalar_select %p90_p3, %s2424_s17, %s92_s13  }
  0x44   : > { %s2318_s9 = scalar_lea.hbm %s2593_s6, 2048  ;;  %p2894_p7 = scmp.ne.s32.totalorder %s2893_s27, 0 }
  0x45   : > { %p2319_p10 = scmp.ne.s32.totalorder %s2593_s6, %s2318_s9  ;;  %s2323_s29 = scalar_lea.hbm %s2883_s2, 6144 }
  0x46   : > { %p2320_p8 = pneg %p2894_p7  ;;  %p2324_p1 = scmp.lt.u32.totalorder %s2593_s6, %s2883_s2 }
  0x47   : > { %p2325_p2 = scmp.lt.u32.totalorder %s2323_s29, %s2318_s9  ;;  %p2327_p5 = scmp.lt.u32.totalorder %s2318_s9, %s2593_s6 }
  0x48   : > { %p2321_p12 = pnand %p2320_p8, %p2319_p10 }
  0x49   : > { %p2326_p4 = por %p2325_p2, %p2324_p1 }
  0x4a   : > { %p2322_p13 = pneg %p2321_p12 }
  0x4b   : > { %p2328_p6 = por %p2327_p5, %p2326_p4 }
  0x4d   : > { %p2329_p9 = pnand %p2328_p6, %p2322_p13 }
  0x4f   : > { %2332 = shalt.err (!%p2329_p9)
}
  0x50   : > { %s2333_s13 = scalar_lea.vmem %s2598_s7, 2048  ;;  %s2442_s14 = smov [#allocation10]  }
  0x51   : > { %p2334_p11 = scmp.ne.s32.totalorder %s2598_s7, %s2333_s13  ;;  %s2338_s5 = sshll.u32 %s2442_s14, 4  ;;  %s2339_s5 = int_to_ptr.vmem [resolvable:$false] %s2338_s5 }
  0x52   : > { %s2340_s15 = scalar_lea.vmem %s2339_s5, 4096  ;;  %p2341_p10 = scmp.lt.s32.totalorder %s2598_s7, %s2339_s5 }
  0x53   : > { %p2336_p0 = pnand %p2334_p11, %p2320_p8  ;;  %p2342_p12 = scmp.lt.s32.totalorder %s2340_s15, %s2333_s13 }
  0x55   : > { %p2337_p3 = pneg %p2336_p0  ;;  %p2343_p1 = por %p2342_p12, %p2341_p10 }
  0x57   : > { %p2344_p2 = pnand %p2343_p1, %p2337_p3 }
  0x59   : > { %2347 = shalt.err (!%p2344_p2)
}
  0x5a   : > { %2134 = dma.hbm_to_vmem [thread:$0]  (!%p2894_p7), %s2593_s6, 2048, %s2598_s7, %s2600_s8, %s2439_s10, %s2439_s10, %s2440_s11  }
  0x5b   : > { %p2895_p8 = scmp.ne.s32.totalorder %s2891_s23, 0 }
  0x5c   : > { %p2896_p13 = scmp.eq.s32.totalorder (!%p2895_p8), %s2501_s21, 0 }
  0x5d   : > { %240 = sbr.rel (%p2895_p8) target bundleno = 1557 (0x615), region = 36 }
  0x64   : > { %2399 = dma.done.wait (%p2896_p13), [#allocation6], 2048   ;;  %p2897_p4 = pmov %p2896_p13 }
  0x66   : > { %2401 = vsyncadd (%p2897_p4), [#allocation6], 4294965248  ;;  %p2898_p5 = pmov %p2897_p4 }
  0x67   : > { %p2899_p6 = pmov %p2897_p4 }
  0x68   : > { %2403 = dma.done.wait (%p2898_p5), [#allocation9], 2048  }
  0x69   : > { %2405 = vsyncadd (%p2899_p6), [#allocation9], 4294965248  ;;  %s250_s27 = sand.u32 1, %s2501_s21   ;;  %s252_s10 = sand.u32 1, %s2420_s16  }
  0x6a   : > { %s1553_s11 = sshll.u32 %s252_s10, 7  ;;  %s251_s23 = scalar_lea.sflag [#allocation6], %s250_s27 }
  0x6b   : > { %s2643_s6 = scalar_lea.vmem [#allocation10], %s1553_s11  ;;  %p2900_p7 = scmp.ne.s32.totalorder %s2890_s22, 0 }
  0x6d   : > { %2407 = dma.done.wait (%p2900_p7), %s251_s23, 2048  }
  0x6e   : > { %2409 = vsyncadd (%p2900_p7), %s251_s23, 4294965248  ;;  %p278_p9 = scmp.lt.s32.totalorder %s2428_s18, 2  ;;  %s2651_s7 = sand.u32 1, %s2428_s18  ;;  %v2443_v0 = vmov 0.0  }
  0x6f   : > { %p283_p11 = scmp.eq.s32.totalorder %s2651_s7, 0  ;;  %289 = vst [vmem:[#allocation4] sm:$0xff] %v2443_v0  ;;  %290 = vst [vmem:[#allocation4 + $0x8] sm:$0xff] %v2443_v0  ;;  %p1554_p0 = scmp.ne.s32.totalorder %s2428_s18, 0 }
  0x70   : > { %291 = vst [vmem:[#allocation4 + $0x10] sm:$0xff] %v2443_v0  ;;  %292 = vst [vmem:[#allocation4 + $0x18] sm:$0xff] %v2443_v0  ;;  %s2657_s22 = scalar_select %p278_p9, %s2428_s18, 2 }
  0x71   : > { %293 = vst [vmem:[#allocation4 + $0x20] sm:$0xff] %v2443_v0  ;;  %294 = vst [vmem:[#allocation4 + $0x28] sm:$0xff] %v2443_v0  ;;  %309 = sbr.rel (%p1554_p0) target bundleno = 376 (0x178), region = 56  ;;  %v343_v1 = vld [vmem:[#allocation8] sm:$0xff] (!%p1554_p0)  ;;  %v344_v2 = vld [vmem:[#allocation8 + $0x8] sm:$0xff] (!%p1554_p0) }
  0x72   : > { %295 = vst [vmem:[#allocation4 + $0x30] sm:$0xff] %v2443_v0  ;;  %296 = vst [vmem:[#allocation4 + $0x38] sm:$0xff] %v2443_v0  ;;  %s280_s26 = scalar_lea.vmem %s2884_s3, %s2657_s22  ;;  %v345_v3 = vld [vmem:[#allocation8 + $0x10] sm:$0xff] (!%p1554_p0)  ;;  %v1918_v4 = vpack.c.bf16 (!%p1554_p0), %v344_v2, %v343_v1  ;;  %v346_v5 = vld [vmem:[#allocation8 + $0x18] sm:$0xff] (!%p1554_p0) }
  0x73   : > { %297 = vst [vmem:[#allocation4 + $0x40] sm:$0xff] %v2443_v0  ;;  %298 = vst [vmem:[#allocation4 + $0x48] sm:$0xff] %v2443_v0  ;;  %v1922_v6 = vpack.c.bf16 (!%p1554_p0), %v346_v5, %v345_v3  ;;  %v347_v7 = vld [vmem:[#allocation8 + $0x20] sm:$0xff] (!%p1554_p0)  ;;  %v348_v8 = vld [vmem:[#allocation8 + $0x28] sm:$0xff] (!%p1554_p0) }
  0x74   : > { %299 = vst [vmem:[#allocation4 + $0x50] sm:$0xff] %v2443_v0  ;;  %300 = vst [vmem:[#allocation4 + $0x58] sm:$0xff] %v2443_v0  ;;  %1919 = vmatprep.subr.bf16.mxu0 (!%p1554_p0), %v1918_v4  ;;  %2046 = vmatprep.subr.bf16.mxu1 (!%p1554_p0), %v1918_v4  ;;  %v1926_v9 = vpack.c.bf16 (!%p1554_p0), %v348_v8, %v347_v7  ;;  %v326_v10 = vld [vmem:[#allocation5] sm:$0xff] (!%p1554_p0)  ;;  %v349_v12 = vld [vmem:[#allocation8 + $0x30] sm:$0xff] (!%p1554_p0) }
  0x75   : > { %301 = vst [vmem:[#allocation4 + $0x60] sm:$0xff] %v2443_v0  ;;  %302 = vst [vmem:[#allocation4 + $0x68] sm:$0xff] %v2443_v0  ;;  %1921 = vmatpush3.bf16.msra.mxu0 (!%p1554_p0), %v1918_v4  ;;  %2054 = vmatpush3.bf16.msra.mxu1 (!%p1554_p0), %v1918_v4  ;;  %v334_v11 = vld [vmem:[#allocation5 + $0x40] sm:$0xff] (!%p1554_p0)  ;;  %v350_v13 = vld [vmem:[#allocation8 + $0x38] sm:$0xff] (!%p1554_p0) }
  0x76   : > { %303 = vst [vmem:[#allocation4 + $0x70] sm:$0xff] %v2443_v0  ;;  %304 = vst [vmem:[#allocation4 + $0x78] sm:$0xff] %v2443_v0  ;;  %1923 = vmatprep.subr.bf16.mxu0 (!%p1554_p0), %v1922_v6  ;;  %2047 = vmatprep.subr.bf16.mxu1 (!%p1554_p0), %v1922_v6  ;;  %v1930_v14 = vpack.c.bf16 (!%p1554_p0), %v350_v13, %v349_v12  ;;  %v351_v15 = vld [vmem:[#allocation8 + $0x40] sm:$0xff] (!%p1554_p0)  ;;  %v352_v16 = vld [vmem:[#allocation8 + $0x48] sm:$0xff] (!%p1554_p0) }
  0x77   : > { %1726 = vmatprep.mubr.f32.mxu0 (!%p1554_p0), %v326_v10  ;;  %1738 = vmatprep.mubr.f32.mxu1 (!%p1554_p0), %v334_v11  ;;  %v1934_v17 = vpack.c.bf16 (!%p1554_p0), %v352_v16, %v351_v15  ;;  %v353_v18 = vld [vmem:[#allocation8 + $0x50] sm:$0xff] (!%p1554_p0)  ;;  %v354_v19 = vld [vmem:[#allocation8 + $0x58] sm:$0xff] (!%p1554_p0)  ;;  %v355_v21 = vld [vmem:[#allocation8 + $0x60] sm:$0xff] (!%p1554_p0) }
  0x78   : > { %v1938_v20 = vpack.c.bf16 %v354_v19, %v353_v18  ;;  %v356_v22 = vld [vmem:[#allocation8 + $0x68] sm:$0xff]  ;;  %v357_v24 = vld [vmem:[#allocation8 + $0x70] sm:$0xff]  ;;  %v358_v25 = vld [vmem:[#allocation8 + $0x78] sm:$0xff] }
  0x79   : > { %1925 = vmatpush3.bf16.msra.mxu0 %v1922_v6  ;;  %2055 = vmatpush3.bf16.msra.mxu1 %v1922_v6  ;;  %v1942_v23 = vpack.c.bf16 %v356_v22, %v355_v21  ;;  %v1946_v26 = vpack.c.bf16 %v358_v25, %v357_v24  ;;  %v327_v27 = vld [vmem:[#allocation5 + $0x8] sm:$0xff]  ;;  %v328_v29 = vld [vmem:[#allocation5 + $0x10] sm:$0xff]  ;;  %v329_v31 = vld [vmem:[#allocation5 + $0x18] sm:$0xff] }
  0x7a   : > { %1927 = vmatprep.subr.bf16.mxu0 %v1926_v9  ;;  %2048 = vmatprep.subr.bf16.mxu1 %v1926_v9  ;;  %v335_v28 = vld [vmem:[#allocation5 + $0x48] sm:$0xff]  ;;  %v336_v30 = vld [vmem:[#allocation5 + $0x50] sm:$0xff]  ;;  %v337_v32 = vld [vmem:[#allocation5 + $0x58] sm:$0xff] }
  0x7b   : > { %v330_v33 = vld [vmem:[#allocation5 + $0x20] sm:$0xff]  ;;  %v331_v35 = vld [vmem:[#allocation5 + $0x28] sm:$0xff]  ;;  %v332_v37 = vld [vmem:[#allocation5 + $0x30] sm:$0xff] }
  0x7c   : > { %v338_v34 = vld [vmem:[#allocation5 + $0x60] sm:$0xff]  ;;  %v339_v36 = vld [vmem:[#allocation5 + $0x68] sm:$0xff]  ;;  %v340_v38 = vld [vmem:[#allocation5 + $0x70] sm:$0xff] }
  0x7d   : > { %1929 = vmatpush3.bf16.msra.mxu0 %v1926_v9  ;;  %2056 = vmatpush3.bf16.msra.mxu1 %v1926_v9  ;;  %v333_v39 = vld [vmem:[#allocation5 + $0x38] sm:$0xff]  ;;  %v311_v41 = vld [vmem:[#allocation4 + $0x8] sm:$0xff]  ;;  %v310_v43 = vld [vmem:[#allocation4] sm:$0xff] }
  0x7e   : > { %1931 = vmatprep.subr.bf16.mxu0 %v1930_v14  ;;  %2049 = vmatprep.subr.bf16.mxu1 %v1930_v14  ;;  %v341_v40 = vld [vmem:[#allocation5 + $0x78] sm:$0xff]  ;;  %v319_v42 = vld [vmem:[#allocation4 + $0x48] sm:$0xff]  ;;  %v318_v44 = vld [vmem:[#allocation4 + $0x40] sm:$0xff] }
  0x7f   : > { %v313_v53 = vld [vmem:[#allocation4 + $0x18] sm:$0xff]  ;;  %v312_v55 = vld [vmem:[#allocation4 + $0x10] sm:$0xff]  ;;  %v315_v1 = vld [vmem:[#allocation4 + $0x28] sm:$0xff] }
  0x80   : > { %v321_v54 = vld [vmem:[#allocation4 + $0x58] sm:$0xff]  ;;  %v320_v56 = vld [vmem:[#allocation4 + $0x50] sm:$0xff]  ;;  %v323_v2 = vld [vmem:[#allocation4 + $0x68] sm:$0xff] }
  0x81   : > { %1933 = vmatpush3.bf16.msra.mxu0 %v1930_v14  ;;  %2057 = vmatpush3.bf16.msra.mxu1 %v1930_v14  ;;  %v314_v3 = vld [vmem:[#allocation4 + $0x20] sm:$0xff]  ;;  %v317_v13 = vld [vmem:[#allocation4 + $0x38] sm:$0xff]  ;;  %v316_v15 = vld [vmem:[#allocation4 + $0x30] sm:$0xff] }
  0x82   : > { %1935 = vmatprep.subr.bf16.mxu0 %v1934_v17  ;;  %2050 = vmatprep.subr.bf16.mxu1 %v1934_v17  ;;  %v322_v4 = vld [vmem:[#allocation4 + $0x60] sm:$0xff]  ;;  %v325_v14 = vld [vmem:[#allocation4 + $0x78] sm:$0xff]  ;;  %v324_v16 = vld [vmem:[#allocation4 + $0x70] sm:$0xff] }
  0x85   : > { %1937 = vmatpush3.bf16.msra.mxu0 %v1934_v17  ;;  %2058 = vmatpush3.bf16.msra.mxu1 %v1934_v17 }
  0x86   : > { %1939 = vmatprep.subr.bf16.mxu0 %v1938_v20  ;;  %2051 = vmatprep.subr.bf16.mxu1 %v1938_v20 }
  0x89   : > { %1941 = vmatpush3.bf16.msra.mxu0 %v1938_v20  ;;  %2059 = vmatpush3.bf16.msra.mxu1 %v1938_v20 }
  0x8a   : > { %1943 = vmatprep.subr.bf16.mxu0 %v1942_v23  ;;  %2052 = vmatprep.subr.bf16.mxu1 %v1942_v23 }
  0x8d   : > { %1945 = vmatpush3.bf16.msra.mxu0 %v1942_v23  ;;  %2060 = vmatpush3.bf16.msra.mxu1 %v1942_v23 }
  0x8e   : > { %1947 = vmatprep.subr.bf16.mxu0 %v1946_v26  ;;  %2053 = vmatprep.subr.bf16.mxu1 %v1946_v26 }
  0x91   : > { %1949 = vmatpush3.bf16.msra.mxu0 %v1946_v26  ;;  %2061 = vmatpush3.bf16.msra.mxu1 %v1946_v26 }
  0x94   : > { %1727 = vmatmul.mubr.f32.vlgmr.msra.gmra.mrb[0].mxu0 %v327_v27  ;;  %1739 = vmatmul.mubr.f32.vlgmr.msra.gmra.mrb[0].mxu1 %v335_v28 }
  0x95   : > { %1729 = vmatprep.mubr.f32.mxu0 %v328_v29  ;;  %1741 = vmatprep.mubr.f32.mxu1 %v336_v30 }
  0x98   : > { %1730 = vmatmul.mubr.f32.gmra.mrb[2].mxu0 %v329_v31  ;;  %1742 = vmatmul.mubr.f32.gmra.mrb[2].mxu1 %v337_v32 }
  0x99   : > { %1732 = vmatprep.mubr.f32.mxu0 %v330_v33  ;;  %1744 = vmatprep.mubr.f32.mxu1 %v338_v34 }
  0x9c   : > { %1733 = vmatmul.mubr.f32.gmra.mrb[4].mxu0 %v331_v35  ;;  %1745 = vmatmul.mubr.f32.gmra.mrb[4].mxu1 %v339_v36 }
  0x9d   : > { %1735 = vmatprep.mubr.f32.mxu0 %v332_v37  ;;  %1747 = vmatprep.mubr.f32.mxu1 %v340_v38 }
  0xa0   : > { %1736 = vmatmul.mubr.f32.gmra.mrb[6].mxu0 %v333_v39  ;;  %1748 = vmatmul.mubr.f32.gmra.mrb[6].mxu1 %v341_v40 }
 0x167   : > { %v1728_v45 = vpop.f32.mrb[0].mxu0  ;;  %v1740_v46 = vpop.f32.mrb[0].mxu1 }
 0x168   : > { %v505_v47 = vadd.f32 %v1728_v45, %v311_v41  ;;  %v513_v48 = vadd.f32 %v1740_v46, %v319_v42  ;;  %v425_v49 = vpop.f32.mrb[1].mxu0  ;;  %v465_v50 = vpop.f32.mrb[1].mxu1 }
 0x169   : > { %v504_v51 = vadd.f32 %v425_v49, %v310_v43  ;;  %v512_v52 = vadd.f32 %v465_v50, %v318_v44 }
 0x16a   : > { %521 = vst [vmem:[#allocation4 + $0x8] sm:$0xff] %v505_v47  ;;  %529 = vst [vmem:[#allocation4 + $0x48] sm:$0xff] %v513_v48 }
 0x16b   : > { %520 = vst [vmem:[#allocation4] sm:$0xff] %v504_v51  ;;  %528 = vst [vmem:[#allocation4 + $0x40] sm:$0xff] %v512_v52  ;;  %v1731_v57 = vpop.f32.mrb[2].mxu0  ;;  %v1743_v58 = vpop.f32.mrb[2].mxu1 }
 0x16c   : > { %v507_v59 = vadd.f32 %v1731_v57, %v313_v53  ;;  %v515_v60 = vadd.f32 %v1743_v58, %v321_v54  ;;  %v435_v61 = vpop.f32.mrb[3].mxu0  ;;  %v475_v62 = vpop.f32.mrb[3].mxu1 }
 0x16d   : > { %v506_v63 = vadd.f32 %v435_v61, %v312_v55  ;;  %v514_v0 = vadd.f32 %v475_v62, %v320_v56 }
 0x16e   : > { %523 = vst [vmem:[#allocation4 + $0x18] sm:$0xff] %v507_v59  ;;  %531 = vst [vmem:[#allocation4 + $0x58] sm:$0xff] %v515_v60 }
 0x16f   : > { %522 = vst [vmem:[#allocation4 + $0x10] sm:$0xff] %v506_v63  ;;  %530 = vst [vmem:[#allocation4 + $0x50] sm:$0xff] %v514_v0  ;;  %v1734_v5 = vpop.f32.mrb[4].mxu0  ;;  %v1746_v6 = vpop.f32.mrb[4].mxu1 }
 0x170   : > { %v509_v7 = vadd.f32 %v1734_v5, %v315_v1  ;;  %v517_v8 = vadd.f32 %v1746_v6, %v323_v2  ;;  %v445_v9 = vpop.f32.mrb[5].mxu0  ;;  %v485_v10 = vpop.f32.mrb[5].mxu1 }
 0x171   : > { %v508_v11 = vadd.f32 %v445_v9, %v314_v3  ;;  %v516_v12 = vadd.f32 %v485_v10, %v322_v4 }
 0x172   : > { %525 = vst [vmem:[#allocation4 + $0x28] sm:$0xff] %v509_v7  ;;  %533 = vst [vmem:[#allocation4 + $0x68] sm:$0xff] %v517_v8 }
 0x173   : > { %524 = vst [vmem:[#allocation4 + $0x20] sm:$0xff] %v508_v11  ;;  %532 = vst [vmem:[#allocation4 + $0x60] sm:$0xff] %v516_v12  ;;  %v1737_v17 = vpop.f32.mrb[6].mxu0  ;;  %v1749_v18 = vpop.f32.mrb[6].mxu1 }
 0x174   : > { %v511_v19 = vadd.f32 %v1737_v17, %v317_v13  ;;  %v519_v20 = vadd.f32 %v1749_v18, %v325_v14  ;;  %v455_v21 = vpop.f32.mrb[7].mxu0  ;;  %v495_v22 = vpop.f32.mrb[7].mxu1 }
 0x175   : > { %v510_v23 = vadd.f32 %v455_v21, %v316_v15  ;;  %v518_v24 = vadd.f32 %v495_v22, %v324_v16 }
 0x176   : > { %527 = vst [vmem:[#allocation4 + $0x38] sm:$0xff] %v511_v19  ;;  %535 = vst [vmem:[#allocation4 + $0x78] sm:$0xff] %v519_v20 }
 0x177   : > { %526 = vst [vmem:[#allocation4 + $0x30] sm:$0xff] %v510_v23  ;;  %534 = vst [vmem:[#allocation4 + $0x70] sm:$0xff] %v518_v24 }
 0x178 PF: > { %p1555_p3 = scmp.ne.s32.totalorder %s2651_s7, 1 }
 0x179   : > { %v572_v25 = vld [vmem:[#allocation2] sm:$0xff] (!%p1555_p3)  ;;  %v573_v26 = vld [vmem:[#allocation2 + $0x8] sm:$0xff] (!%p1555_p3)  ;;  %v574_v27 = vld [vmem:[#allocation2 + $0x10] sm:$0xff] (!%p1555_p3) }
 0x17a   : > { %538 = sbr.rel (%p1555_p3) target bundleno = 640 (0x280), region = 60  ;;  %v1950_v28 = vpack.c.bf16 (!%p1555_p3), %v573_v26, %v572_v25  ;;  %v575_v29 = vld [vmem:[#allocation2 + $0x18] sm:$0xff] (!%p1555_p3)  ;;  %v576_v31 = vld [vmem:[#allocation2 + $0x20] sm:$0xff] (!%p1555_p3)  ;;  %v577_v32 = vld [vmem:[#allocation2 + $0x28] sm:$0xff] (!%p1555_p3) }
 0x17b   : > { %v1954_v30 = vpack.c.bf16 (!%p1555_p3), %v575_v29, %v574_v27  ;;  %v1958_v33 = vpack.c.bf16 (!%p1555_p3), %v577_v32, %v576_v31  ;;  %v555_v34 = vld [vmem:[#allocation5] sm:$0xff] (!%p1555_p3)  ;;  %v578_v36 = vld [vmem:[#allocation2 + $0x30] sm:$0xff] (!%p1555_p3)  ;;  %v579_v37 = vld [vmem:[#allocation2 + $0x38] sm:$0xff] (!%p1555_p3) }
 0x17c   : > { %1951 = vmatprep.subr.bf16.mxu0 (!%p1555_p3), %v1950_v28  ;;  %2062 = vmatprep.subr.bf16.mxu1 (!%p1555_p3), %v1950_v28  ;;  %v563_v35 = vld [vmem:[#allocation5 + $0x40] sm:$0xff] (!%p1555_p3)  ;;  %v1962_v38 = vpack.c.bf16 (!%p1555_p3), %v579_v37, %v578_v36  ;;  %v581_v40 = vld [vmem:[#allocation2 + $0x48] sm:$0xff] (!%p1555_p3)  ;;  %v582_v42 = vld [vmem:[#allocation2 + $0x50] sm:$0xff] (!%p1555_p3) }
 0x17d   : > { %1953 = vmatpush3.bf16.msra.mxu0 (!%p1555_p3), %v1950_v28  ;;  %2070 = vmatpush3.bf16.msra.mxu1 (!%p1555_p3), %v1950_v28  ;;  %v580_v39 = vld [vmem:[#allocation2 + $0x40] sm:$0xff] (!%p1555_p3)  ;;  %v583_v43 = vld [vmem:[#allocation2 + $0x58] sm:$0xff] (!%p1555_p3)  ;;  %v585_v46 = vld [vmem:[#allocation2 + $0x68] sm:$0xff] (!%p1555_p3) }
 0x17e   : > { %1955 = vmatprep.subr.bf16.mxu0 (!%p1555_p3), %v1954_v30  ;;  %2063 = vmatprep.subr.bf16.mxu1 (!%p1555_p3), %v1954_v30  ;;  %v1966_v41 = vpack.c.bf16 (!%p1555_p3), %v581_v40, %v580_v39  ;;  %v1970_v44 = vpack.c.bf16 (!%p1555_p3), %v583_v43, %v582_v42  ;;  %v584_v45 = vld [vmem:[#allocation2 + $0x60] sm:$0xff] (!%p1555_p3)  ;;  %v586_v48 = vld [vmem:[#allocation2 + $0x70] sm:$0xff] (!%p1555_p3)  ;;  %v587_v49 = vld [vmem:[#allocation2 + $0x78] sm:$0xff] (!%p1555_p3) }
 0x17f   : > { %1782 = vmatprep.mubr.f32.mxu0 (!%p1555_p3), %v555_v34  ;;  %1794 = vmatprep.mubr.f32.mxu1 (!%p1555_p3), %v563_v35  ;;  %v1974_v47 = vpack.c.bf16 (!%p1555_p3), %v585_v46, %v584_v45  ;;  %v1978_v50 = vpack.c.bf16 (!%p1555_p3), %v587_v49, %v586_v48  ;;  %v556_v51 = vld [vmem:[#allocation5 + $0x8] sm:$0xff] (!%p1555_p3)  ;;  %v557_v53 = vld [vmem:[#allocation5 + $0x10] sm:$0xff] (!%p1555_p3)  ;;  %v558_v55 = vld [vmem:[#allocation5 + $0x18] sm:$0xff] (!%p1555_p3) }
 0x180   : > { %v564_v52 = vld [vmem:[#allocation5 + $0x48] sm:$0xff] (!%p1555_p3)  ;;  %v565_v54 = vld [vmem:[#allocation5 + $0x50] sm:$0xff] (!%p1555_p3)  ;;  %v566_v56 = vld [vmem:[#allocation5 + $0x58] sm:$0xff] (!%p1555_p3) }
 0x181   : > { %1957 = vmatpush3.bf16.msra.mxu0 %v1954_v30  ;;  %2071 = vmatpush3.bf16.msra.mxu1 %v1954_v30  ;;  %v559_v57 = vld [vmem:[#allocation5 + $0x20] sm:$0xff]  ;;  %v560_v59 = vld [vmem:[#allocation5 + $0x28] sm:$0xff]  ;;  %v561_v61 = vld [vmem:[#allocation5 + $0x30] sm:$0xff] }
 0x182   : > { %1959 = vmatprep.subr.bf16.mxu0 %v1958_v33  ;;  %2064 = vmatprep.subr.bf16.mxu1 %v1958_v33  ;;  %v567_v58 = vld [vmem:[#allocation5 + $0x60] sm:$0xff]  ;;  %v568_v60 = vld [vmem:[#allocation5 + $0x68] sm:$0xff]  ;;  %v569_v62 = vld [vmem:[#allocation5 + $0x70] sm:$0xff] }
 0x183   : > { %v562_v63 = vld [vmem:[#allocation5 + $0x38] sm:$0xff]  ;;  %v540_v1 = vld [vmem:[#allocation4 + $0x8] sm:$0xff]  ;;  %v539_v3 = vld [vmem:[#allocation4] sm:$0xff] }
 0x184   : > { %v570_v0 = vld [vmem:[#allocation5 + $0x78] sm:$0xff]  ;;  %v548_v2 = vld [vmem:[#allocation4 + $0x48] sm:$0xff]  ;;  %v547_v4 = vld [vmem:[#allocation4 + $0x40] sm:$0xff] }
 0x185   : > { %1961 = vmatpush3.bf16.msra.mxu0 %v1958_v33  ;;  %2072 = vmatpush3.bf16.msra.mxu1 %v1958_v33  ;;  %v542_v13 = vld [vmem:[#allocation4 + $0x18] sm:$0xff]  ;;  %v541_v15 = vld [vmem:[#allocation4 + $0x10] sm:$0xff]  ;;  %v544_v25 = vld [vmem:[#allocation4 + $0x28] sm:$0xff] }
 0x186   : > { %1963 = vmatprep.subr.bf16.mxu0 %v1962_v38  ;;  %2065 = vmatprep.subr.bf16.mxu1 %v1962_v38  ;;  %v550_v14 = vld [vmem:[#allocation4 + $0x58] sm:$0xff]  ;;  %v549_v16 = vld [vmem:[#allocation4 + $0x50] sm:$0xff]  ;;  %v552_v26 = vld [vmem:[#allocation4 + $0x68] sm:$0xff] }
 0x187   : > { %v543_v27 = vld [vmem:[#allocation4 + $0x20] sm:$0xff]  ;;  %v546_v37 = vld [vmem:[#allocation4 + $0x38] sm:$0xff]  ;;  %v545_v39 = vld [vmem:[#allocation4 + $0x30] sm:$0xff] }
 0x188   : > { %v551_v28 = vld [vmem:[#allocation4 + $0x60] sm:$0xff]  ;;  %v553_v40 = vld [vmem:[#allocation4 + $0x70] sm:$0xff] }
 0x189   : > { %1965 = vmatpush3.bf16.msra.mxu0 %v1962_v38  ;;  %2073 = vmatpush3.bf16.msra.mxu1 %v1962_v38  ;;  %v554_v38 = vld [vmem:[#allocation4 + $0x78] sm:$0xff] }
 0x18a   : > { %1967 = vmatprep.subr.bf16.mxu0 %v1966_v41  ;;  %2066 = vmatprep.subr.bf16.mxu1 %v1966_v41 }
 0x18d   : > { %1969 = vmatpush3.bf16.msra.mxu0 %v1966_v41  ;;  %2074 = vmatpush3.bf16.msra.mxu1 %v1966_v41 }
 0x18e   : > { %1971 = vmatprep.subr.bf16.mxu0 %v1970_v44  ;;  %2067 = vmatprep.subr.bf16.mxu1 %v1970_v44 }
 0x191   : > { %1973 = vmatpush3.bf16.msra.mxu0 %v1970_v44  ;;  %2075 = vmatpush3.bf16.msra.mxu1 %v1970_v44 }
 0x192   : > { %1975 = vmatprep.subr.bf16.mxu0 %v1974_v47  ;;  %2068 = vmatprep.subr.bf16.mxu1 %v1974_v47 }
 0x195   : > { %1977 = vmatpush3.bf16.msra.mxu0 %v1974_v47  ;;  %2076 = vmatpush3.bf16.msra.mxu1 %v1974_v47 }
 0x196   : > { %1979 = vmatprep.subr.bf16.mxu0 %v1978_v50  ;;  %2069 = vmatprep.subr.bf16.mxu1 %v1978_v50 }
 0x199   : > { %1981 = vmatpush3.bf16.msra.mxu0 %v1978_v50  ;;  %2077 = vmatpush3.bf16.msra.mxu1 %v1978_v50 }
 0x19c   : > { %1783 = vmatmul.mubr.f32.vlgmr.msra.gmra.mrb[0].mxu0 %v556_v51  ;;  %1795 = vmatmul.mubr.f32.vlgmr.msra.gmra.mrb[0].mxu1 %v564_v52 }
 0x19d   : > { %1785 = vmatprep.mubr.f32.mxu0 %v557_v53  ;;  %1797 = vmatprep.mubr.f32.mxu1 %v565_v54 }
 0x1a0   : > { %1786 = vmatmul.mubr.f32.gmra.mrb[2].mxu0 %v558_v55  ;;  %1798 = vmatmul.mubr.f32.gmra.mrb[2].mxu1 %v566_v56 }
 0x1a1   : > { %1788 = vmatprep.mubr.f32.mxu0 %v559_v57  ;;  %1800 = vmatprep.mubr.f32.mxu1 %v567_v58 }
 0x1a4   : > { %1789 = vmatmul.mubr.f32.gmra.mrb[4].mxu0 %v560_v59  ;;  %1801 = vmatmul.mubr.f32.gmra.mrb[4].mxu1 %v568_v60 }
 0x1a5   : > { %1791 = vmatprep.mubr.f32.mxu0 %v561_v61  ;;  %1803 = vmatprep.mubr.f32.mxu1 %v569_v62 }
 0x1a8   : > { %1792 = vmatmul.mubr.f32.gmra.mrb[6].mxu0 %v562_v63  ;;  %1804 = vmatmul.mubr.f32.gmra.mrb[6].mxu1 %v570_v0 }
 0x26f   : > { %v1784_v5 = vpop.f32.mrb[0].mxu0  ;;  %v1796_v6 = vpop.f32.mrb[0].mxu1 }
 0x270   : > { %v734_v7 = vadd.f32 %v1784_v5, %v540_v1  ;;  %v742_v8 = vadd.f32 %v1796_v6, %v548_v2  ;;  %v654_v9 = vpop.f32.mrb[1].mxu0  ;;  %v694_v10 = vpop.f32.mrb[1].mxu1 }
 0x271   : > { %v733_v11 = vadd.f32 %v654_v9, %v539_v3  ;;  %v741_v12 = vadd.f32 %v694_v10, %v547_v4 }
 0x272   : > { %750 = vst [vmem:[#allocation4 + $0x8] sm:$0xff] %v734_v7  ;;  %758 = vst [vmem:[#allocation4 + $0x48] sm:$0xff] %v742_v8 }
 0x273   : > { %749 = vst [vmem:[#allocation4] sm:$0xff] %v733_v11  ;;  %757 = vst [vmem:[#allocation4 + $0x40] sm:$0xff] %v741_v12  ;;  %v1787_v17 = vpop.f32.mrb[2].mxu0  ;;  %v1799_v18 = vpop.f32.mrb[2].mxu1 }
 0x274   : > { %v736_v19 = vadd.f32 %v1787_v17, %v542_v13  ;;  %v744_v20 = vadd.f32 %v1799_v18, %v550_v14  ;;  %v664_v21 = vpop.f32.mrb[3].mxu0  ;;  %v704_v22 = vpop.f32.mrb[3].mxu1 }
 0x275   : > { %v735_v23 = vadd.f32 %v664_v21, %v541_v15  ;;  %v743_v24 = vadd.f32 %v704_v22, %v549_v16 }
 0x276   : > { %752 = vst [vmem:[#allocation4 + $0x18] sm:$0xff] %v736_v19  ;;  %760 = vst [vmem:[#allocation4 + $0x58] sm:$0xff] %v744_v20 }
 0x277   : > { %751 = vst [vmem:[#allocation4 + $0x10] sm:$0xff] %v735_v23  ;;  %759 = vst [vmem:[#allocation4 + $0x50] sm:$0xff] %v743_v24  ;;  %v1790_v29 = vpop.f32.mrb[4].mxu0  ;;  %v1802_v30 = vpop.f32.mrb[4].mxu1 }
 0x278   : > { %v738_v31 = vadd.f32 %v1790_v29, %v544_v25  ;;  %v746_v32 = vadd.f32 %v1802_v30, %v552_v26  ;;  %v674_v33 = vpop.f32.mrb[5].mxu0  ;;  %v714_v34 = vpop.f32.mrb[5].mxu1 }
 0x279   : > { %v737_v35 = vadd.f32 %v674_v33, %v543_v27  ;;  %v745_v36 = vadd.f32 %v714_v34, %v551_v28 }
 0x27a   : > { %754 = vst [vmem:[#allocation4 + $0x28] sm:$0xff] %v738_v31  ;;  %762 = vst [vmem:[#allocation4 + $0x68] sm:$0xff] %v746_v32 }
 0x27b   : > { %753 = vst [vmem:[#allocation4 + $0x20] sm:$0xff] %v737_v35  ;;  %761 = vst [vmem:[#allocation4 + $0x60] sm:$0xff] %v745_v36  ;;  %v1793_v41 = vpop.f32.mrb[6].mxu0  ;;  %v1805_v42 = vpop.f32.mrb[6].mxu1 }
 0x27c   : > { %v740_v43 = vadd.f32 %v1793_v41, %v546_v37  ;;  %v748_v44 = vadd.f32 %v1805_v42, %v554_v38  ;;  %v684_v45 = vpop.f32.mrb[7].mxu0  ;;  %v724_v46 = vpop.f32.mrb[7].mxu1 }
 0x27d   : > { %v739_v47 = vadd.f32 %v684_v45, %v545_v39  ;;  %v747_v48 = vadd.f32 %v724_v46, %v553_v40 }
 0x27e   : > { %756 = vst [vmem:[#allocation4 + $0x38] sm:$0xff] %v740_v43  ;;  %764 = vst [vmem:[#allocation4 + $0x78] sm:$0xff] %v748_v44 }
 0x27f   : > { %755 = vst [vmem:[#allocation4 + $0x30] sm:$0xff] %v739_v47  ;;  %763 = vst [vmem:[#allocation4 + $0x70] sm:$0xff] %v747_v48 }
 0x280 PF: > { %p765_p10 = scmp.gt.s32.totalorder %s2428_s18, 0 }
 0x282   : > { %p766_p12 = pnand %p765_p10, %p283_p11 }
 0x283   : > { %v803_v49 = vld [vmem:[#allocation3] sm:$0xff] (!%p766_p12)  ;;  %v804_v50 = vld [vmem:[#allocation3 + $0x8] sm:$0xff] (!%p766_p12)  ;;  %v805_v51 = vld [vmem:[#allocation3 + $0x10] sm:$0xff] (!%p766_p12) }
 0x284   : > { %769 = sbr.rel (%p766_p12) target bundleno = 906 (0x38a), region = 64  ;;  %v1982_v52 = vpack.c.bf16 (!%p766_p12), %v804_v50, %v803_v49  ;;  %v806_v53 = vld [vmem:[#allocation3 + $0x18] sm:$0xff] (!%p766_p12)  ;;  %v807_v55 = vld [vmem:[#allocation3 + $0x20] sm:$0xff] (!%p766_p12)  ;;  %v808_v56 = vld [vmem:[#allocation3 + $0x28] sm:$0xff] (!%p766_p12) }
 0x285   : > { %v1986_v54 = vpack.c.bf16 (!%p766_p12), %v806_v53, %v805_v51  ;;  %v1990_v57 = vpack.c.bf16 (!%p766_p12), %v808_v56, %v807_v55  ;;  %v786_v58 = vld [vmem:[#allocation5] sm:$0xff] (!%p766_p12)  ;;  %v809_v60 = vld [vmem:[#allocation3 + $0x30] sm:$0xff] (!%p766_p12)  ;;  %v810_v61 = vld [vmem:[#allocation3 + $0x38] sm:$0xff] (!%p766_p12) }
 0x286   : > { %1983 = vmatprep.subr.bf16.mxu0 (!%p766_p12), %v1982_v52  ;;  %2078 = vmatprep.subr.bf16.mxu1 (!%p766_p12), %v1982_v52  ;;  %v794_v59 = vld [vmem:[#allocation5 + $0x40] sm:$0xff] (!%p766_p12)  ;;  %v1994_v62 = vpack.c.bf16 (!%p766_p12), %v810_v61, %v809_v60  ;;  %v812_v0 = vld [vmem:[#allocation3 + $0x48] sm:$0xff] (!%p766_p12)  ;;  %v813_v2 = vld [vmem:[#allocation3 + $0x50] sm:$0xff] (!%p766_p12) }
 0x287   : > { %1985 = vmatpush3.bf16.msra.mxu0 (!%p766_p12), %v1982_v52  ;;  %2086 = vmatpush3.bf16.msra.mxu1 (!%p766_p12), %v1982_v52  ;;  %v811_v63 = vld [vmem:[#allocation3 + $0x40] sm:$0xff] (!%p766_p12)  ;;  %v814_v3 = vld [vmem:[#allocation3 + $0x58] sm:$0xff] (!%p766_p12)  ;;  %v816_v6 = vld [vmem:[#allocation3 + $0x68] sm:$0xff] (!%p766_p12) }
 0x288   : > { %1987 = vmatprep.subr.bf16.mxu0 (!%p766_p12), %v1986_v54  ;;  %2079 = vmatprep.subr.bf16.mxu1 (!%p766_p12), %v1986_v54  ;;  %v1998_v1 = vpack.c.bf16 (!%p766_p12), %v812_v0, %v811_v63  ;;  %v2002_v4 = vpack.c.bf16 (!%p766_p12), %v814_v3, %v813_v2  ;;  %v815_v5 = vld [vmem:[#allocation3 + $0x60] sm:$0xff] (!%p766_p12)  ;;  %v817_v8 = vld [vmem:[#allocation3 + $0x70] sm:$0xff] (!%p766_p12)  ;;  %v818_v9 = vld [vmem:[#allocation3 + $0x78] sm:$0xff] (!%p766_p12) }
 0x289   : > { %1838 = vmatprep.mubr.f32.mxu0 (!%p766_p12), %v786_v58  ;;  %1850 = vmatprep.mubr.f32.mxu1 (!%p766_p12), %v794_v59  ;;  %v2006_v7 = vpack.c.bf16 (!%p766_p12), %v816_v6, %v815_v5  ;;  %v2010_v10 = vpack.c.bf16 (!%p766_p12), %v818_v9, %v817_v8  ;;  %v787_v11 = vld [vmem:[#allocation5 + $0x8] sm:$0xff] (!%p766_p12)  ;;  %v788_v13 = vld [vmem:[#allocation5 + $0x10] sm:$0xff] (!%p766_p12)  ;;  %v789_v15 = vld [vmem:[#allocation5 + $0x18] sm:$0xff] (!%p766_p12) }
 0x28a   : > { %v795_v12 = vld [vmem:[#allocation5 + $0x48] sm:$0xff] (!%p766_p12)  ;;  %v796_v14 = vld [vmem:[#allocation5 + $0x50] sm:$0xff] (!%p766_p12)  ;;  %v797_v16 = vld [vmem:[#allocation5 + $0x58] sm:$0xff] (!%p766_p12) }
 0x28b   : > { %1989 = vmatpush3.bf16.msra.mxu0 %v1986_v54  ;;  %2087 = vmatpush3.bf16.msra.mxu1 %v1986_v54  ;;  %v790_v17 = vld [vmem:[#allocation5 + $0x20] sm:$0xff]  ;;  %v791_v19 = vld [vmem:[#allocation5 + $0x28] sm:$0xff]  ;;  %v792_v21 = vld [vmem:[#allocation5 + $0x30] sm:$0xff] }
 0x28c   : > { %1991 = vmatprep.subr.bf16.mxu0 %v1990_v57  ;;  %2080 = vmatprep.subr.bf16.mxu1 %v1990_v57  ;;  %v798_v18 = vld [vmem:[#allocation5 + $0x60] sm:$0xff]  ;;  %v799_v20 = vld [vmem:[#allocation5 + $0x68] sm:$0xff]  ;;  %v800_v22 = vld [vmem:[#allocation5 + $0x70] sm:$0xff] }
 0x28d   : > { %v793_v23 = vld [vmem:[#allocation5 + $0x38] sm:$0xff]  ;;  %v771_v25 = vld [vmem:[#allocation4 + $0x8] sm:$0xff]  ;;  %v770_v27 = vld [vmem:[#allocation4] sm:$0xff] }
 0x28e   : > { %v801_v24 = vld [vmem:[#allocation5 + $0x78] sm:$0xff]  ;;  %v779_v26 = vld [vmem:[#allocation4 + $0x48] sm:$0xff]  ;;  %v778_v28 = vld [vmem:[#allocation4 + $0x40] sm:$0xff] }
 0x28f   : > { %1993 = vmatpush3.bf16.msra.mxu0 %v1990_v57  ;;  %2088 = vmatpush3.bf16.msra.mxu1 %v1990_v57  ;;  %v773_v37 = vld [vmem:[#allocation4 + $0x18] sm:$0xff]  ;;  %v772_v39 = vld [vmem:[#allocation4 + $0x10] sm:$0xff]  ;;  %v775_v49 = vld [vmem:[#allocation4 + $0x28] sm:$0xff] }
 0x290   : > { %1995 = vmatprep.subr.bf16.mxu0 %v1994_v62  ;;  %2081 = vmatprep.subr.bf16.mxu1 %v1994_v62  ;;  %v781_v38 = vld [vmem:[#allocation4 + $0x58] sm:$0xff]  ;;  %v780_v40 = vld [vmem:[#allocation4 + $0x50] sm:$0xff]  ;;  %v783_v50 = vld [vmem:[#allocation4 + $0x68] sm:$0xff] }
 0x291   : > { %v774_v51 = vld [vmem:[#allocation4 + $0x20] sm:$0xff]  ;;  %v777_v61 = vld [vmem:[#allocation4 + $0x38] sm:$0xff]  ;;  %v776_v63 = vld [vmem:[#allocation4 + $0x30] sm:$0xff] }
 0x292   : > { %v782_v52 = vld [vmem:[#allocation4 + $0x60] sm:$0xff]  ;;  %v784_v0 = vld [vmem:[#allocation4 + $0x70] sm:$0xff] }
 0x293   : > { %1997 = vmatpush3.bf16.msra.mxu0 %v1994_v62  ;;  %2089 = vmatpush3.bf16.msra.mxu1 %v1994_v62  ;;  %v785_v62 = vld [vmem:[#allocation4 + $0x78] sm:$0xff] }
 0x294   : > { %1999 = vmatprep.subr.bf16.mxu0 %v1998_v1  ;;  %2082 = vmatprep.subr.bf16.mxu1 %v1998_v1 }
 0x297   : > { %2001 = vmatpush3.bf16.msra.mxu0 %v1998_v1  ;;  %2090 = vmatpush3.bf16.msra.mxu1 %v1998_v1 }
 0x298   : > { %2003 = vmatprep.subr.bf16.mxu0 %v2002_v4  ;;  %2083 = vmatprep.subr.bf16.mxu1 %v2002_v4 }
 0x29b   : > { %2005 = vmatpush3.bf16.msra.mxu0 %v2002_v4  ;;  %2091 = vmatpush3.bf16.msra.mxu1 %v2002_v4 }
 0x29c   : > { %2007 = vmatprep.subr.bf16.mxu0 %v2006_v7  ;;  %2084 = vmatprep.subr.bf16.mxu1 %v2006_v7 }
 0x29f   : > { %2009 = vmatpush3.bf16.msra.mxu0 %v2006_v7  ;;  %2092 = vmatpush3.bf16.msra.mxu1 %v2006_v7 }
 0x2a0   : > { %2011 = vmatprep.subr.bf16.mxu0 %v2010_v10  ;;  %2085 = vmatprep.subr.bf16.mxu1 %v2010_v10 }
 0x2a3   : > { %2013 = vmatpush3.bf16.msra.mxu0 %v2010_v10  ;;  %2093 = vmatpush3.bf16.msra.mxu1 %v2010_v10 }
 0x2a6   : > { %1839 = vmatmul.mubr.f32.vlgmr.msra.gmra.mrb[0].mxu0 %v787_v11  ;;  %1851 = vmatmul.mubr.f32.vlgmr.msra.gmra.mrb[0].mxu1 %v795_v12 }
 0x2a7   : > { %1841 = vmatprep.mubr.f32.mxu0 %v788_v13  ;;  %1853 = vmatprep.mubr.f32.mxu1 %v796_v14 }
 0x2aa   : > { %1842 = vmatmul.mubr.f32.gmra.mrb[2].mxu0 %v789_v15  ;;  %1854 = vmatmul.mubr.f32.gmra.mrb[2].mxu1 %v797_v16 }
 0x2ab   : > { %1844 = vmatprep.mubr.f32.mxu0 %v790_v17  ;;  %1856 = vmatprep.mubr.f32.mxu1 %v798_v18 }
 0x2ae   : > { %1845 = vmatmul.mubr.f32.gmra.mrb[4].mxu0 %v791_v19  ;;  %1857 = vmatmul.mubr.f32.gmra.mrb[4].mxu1 %v799_v20 }
 0x2af   : > { %1847 = vmatprep.mubr.f32.mxu0 %v792_v21  ;;  %1859 = vmatprep.mubr.f32.mxu1 %v800_v22 }
 0x2b2   : > { %1848 = vmatmul.mubr.f32.gmra.mrb[6].mxu0 %v793_v23  ;;  %1860 = vmatmul.mubr.f32.gmra.mrb[6].mxu1 %v801_v24 }
 0x379   : > { %v1840_v29 = vpop.f32.mrb[0].mxu0  ;;  %v1852_v30 = vpop.f32.mrb[0].mxu1 }
 0x37a   : > { %v965_v31 = vadd.f32 %v1840_v29, %v771_v25  ;;  %v973_v32 = vadd.f32 %v1852_v30, %v779_v26  ;;  %v885_v33 = vpop.f32.mrb[1].mxu0  ;;  %v925_v34 = vpop.f32.mrb[1].mxu1 }
 0x37b   : > { %v964_v35 = vadd.f32 %v885_v33, %v770_v27  ;;  %v972_v36 = vadd.f32 %v925_v34, %v778_v28 }
 0x37c   : > { %981 = vst [vmem:[#allocation4 + $0x8] sm:$0xff] %v965_v31  ;;  %989 = vst [vmem:[#allocation4 + $0x48] sm:$0xff] %v973_v32 }
 0x37d   : > { %980 = vst [vmem:[#allocation4] sm:$0xff] %v964_v35  ;;  %988 = vst [vmem:[#allocation4 + $0x40] sm:$0xff] %v972_v36  ;;  %v1843_v41 = vpop.f32.mrb[2].mxu0  ;;  %v1855_v42 = vpop.f32.mrb[2].mxu1 }
 0x37e   : > { %v967_v43 = vadd.f32 %v1843_v41, %v773_v37  ;;  %v975_v44 = vadd.f32 %v1855_v42, %v781_v38  ;;  %v895_v45 = vpop.f32.mrb[3].mxu0  ;;  %v935_v46 = vpop.f32.mrb[3].mxu1 }
 0x37f   : > { %v966_v47 = vadd.f32 %v895_v45, %v772_v39  ;;  %v974_v48 = vadd.f32 %v935_v46, %v780_v40 }
 0x380   : > { %983 = vst [vmem:[#allocation4 + $0x18] sm:$0xff] %v967_v43  ;;  %991 = vst [vmem:[#allocation4 + $0x58] sm:$0xff] %v975_v44 }
 0x381   : > { %982 = vst [vmem:[#allocation4 + $0x10] sm:$0xff] %v966_v47  ;;  %990 = vst [vmem:[#allocation4 + $0x50] sm:$0xff] %v974_v48  ;;  %v1846_v53 = vpop.f32.mrb[4].mxu0  ;;  %v1858_v54 = vpop.f32.mrb[4].mxu1 }
 0x382   : > { %v969_v55 = vadd.f32 %v1846_v53, %v775_v49  ;;  %v977_v56 = vadd.f32 %v1858_v54, %v783_v50  ;;  %v905_v57 = vpop.f32.mrb[5].mxu0  ;;  %v945_v58 = vpop.f32.mrb[5].mxu1 }
 0x383   : > { %v968_v59 = vadd.f32 %v905_v57, %v774_v51  ;;  %v976_v60 = vadd.f32 %v945_v58, %v782_v52 }
 0x384   : > { %985 = vst [vmem:[#allocation4 + $0x28] sm:$0xff] %v969_v55  ;;  %993 = vst [vmem:[#allocation4 + $0x68] sm:$0xff] %v977_v56 }
 0x385   : > { %984 = vst [vmem:[#allocation4 + $0x20] sm:$0xff] %v968_v59  ;;  %992 = vst [vmem:[#allocation4 + $0x60] sm:$0xff] %v976_v60  ;;  %v1849_v1 = vpop.f32.mrb[6].mxu0  ;;  %v1861_v2 = vpop.f32.mrb[6].mxu1 }
 0x386   : > { %v971_v3 = vadd.f32 %v1849_v1, %v777_v61  ;;  %v979_v4 = vadd.f32 %v1861_v2, %v785_v62  ;;  %v915_v5 = vpop.f32.mrb[7].mxu0  ;;  %v955_v6 = vpop.f32.mrb[7].mxu1 }
 0x387   : > { %v970_v7 = vadd.f32 %v915_v5, %v776_v63  ;;  %v978_v8 = vadd.f32 %v955_v6, %v784_v0 }
 0x388   : > { %987 = vst [vmem:[#allocation4 + $0x38] sm:$0xff] %v971_v3  ;;  %995 = vst [vmem:[#allocation4 + $0x78] sm:$0xff] %v979_v4 }
 0x389   : > { %986 = vst [vmem:[#allocation4 + $0x30] sm:$0xff] %v970_v7  ;;  %994 = vst [vmem:[#allocation4 + $0x70] sm:$0xff] %v978_v8 }
 0x38a PF: > { %v1015_v9 = vld [vmem:[%s2643_s6] sm:$0xff]  ;;  %v1016_v10 = vld [vmem:[%s2643_s6 + $0x8] sm:$0xff]  ;;  %v1017_v11 = vld [vmem:[%s2643_s6 + $0x10] sm:$0xff]  ;;  %p1557_p1 = scmp.ge.s32.totalorder %s2428_s18, 2 }
 0x38b   : > { %v2014_v12 = vpack.c.bf16 %v1016_v10, %v1015_v9  ;;  %v1018_v13 = vld [vmem:[%s2643_s6 + $0x18] sm:$0xff]  ;;  %v1019_v15 = vld [vmem:[%s2643_s6 + $0x20] sm:$0xff]  ;;  %v1020_v16 = vld [vmem:[%s2643_s6 + $0x28] sm:$0xff]  ;;  %p1558_p2 = scmp.ne.s32.totalorder (!%p1557_p1), %s2651_s7, 0 }
 0x38c   : > { %v2018_v14 = vpack.c.bf16 %v1018_v13, %v1017_v11  ;;  %v2022_v17 = vpack.c.bf16 %v1020_v16, %v1019_v15  ;;  %v999_v18 = vld [vmem:[#allocation4] sm:$0xff]  ;;  %v1021_v20 = vld [vmem:[%s2643_s6 + $0x30] sm:$0xff]  ;;  %v1022_v21 = vld [vmem:[%s2643_s6 + $0x38] sm:$0xff] }
 0x38d   : > { %2015 = vmatprep.subr.bf16.mxu0 %v2014_v12  ;;  %2094 = vmatprep.subr.bf16.mxu1 %v2014_v12  ;;  %v1007_v19 = vld [vmem:[#allocation4 + $0x40] sm:$0xff]  ;;  %v2026_v22 = vpack.c.bf16 %v1022_v21, %v1021_v20  ;;  %v1024_v24 = vld [vmem:[%s2643_s6 + $0x48] sm:$0xff]  ;;  %v1025_v26 = vld [vmem:[%s2643_s6 + $0x50] sm:$0xff] }
 0x38e   : > { %2017 = vmatpush3.bf16.msra.mxu0 %v2014_v12  ;;  %2102 = vmatpush3.bf16.msra.mxu1 %v2014_v12  ;;  %v1023_v23 = vld [vmem:[%s2643_s6 + $0x40] sm:$0xff]  ;;  %v1026_v27 = vld [vmem:[%s2643_s6 + $0x58] sm:$0xff]  ;;  %v1028_v30 = vld [vmem:[%s2643_s6 + $0x68] sm:$0xff] }
 0x38f   : > { %2019 = vmatprep.subr.bf16.mxu0 %v2018_v14  ;;  %2095 = vmatprep.subr.bf16.mxu1 %v2018_v14  ;;  %v2030_v25 = vpack.c.bf16 %v1024_v24, %v1023_v23  ;;  %v2034_v28 = vpack.c.bf16 %v1026_v27, %v1025_v26  ;;  %v1027_v29 = vld [vmem:[%s2643_s6 + $0x60] sm:$0xff]  ;;  %v1029_v32 = vld [vmem:[%s2643_s6 + $0x70] sm:$0xff]  ;;  %v1030_v33 = vld [vmem:[%s2643_s6 + $0x78] sm:$0xff] }
 0x390   : > { %1894 = vmatprep.mubr.f32.mxu0 %v999_v18  ;;  %1906 = vmatprep.mubr.f32.mxu1 %v1007_v19  ;;  %v2038_v31 = vpack.c.bf16 %v1028_v30, %v1027_v29  ;;  %v2042_v34 = vpack.c.bf16 %v1030_v33, %v1029_v32  ;;  %v1000_v35 = vld [vmem:[#allocation4 + $0x8] sm:$0xff]  ;;  %v1001_v37 = vld [vmem:[#allocation4 + $0x10] sm:$0xff]  ;;  %v1002_v39 = vld [vmem:[#allocation4 + $0x18] sm:$0xff] }
 0x391   : > { %v1008_v36 = vld [vmem:[#allocation4 + $0x48] sm:$0xff]  ;;  %v1009_v38 = vld [vmem:[#allocation4 + $0x50] sm:$0xff]  ;;  %v1010_v40 = vld [vmem:[#allocation4 + $0x58] sm:$0xff] }
 0x392   : > { %2021 = vmatpush3.bf16.msra.mxu0 %v2018_v14  ;;  %2103 = vmatpush3.bf16.msra.mxu1 %v2018_v14  ;;  %v1003_v41 = vld [vmem:[#allocation4 + $0x20] sm:$0xff]  ;;  %v1004_v43 = vld [vmem:[#allocation4 + $0x28] sm:$0xff]  ;;  %v1005_v45 = vld [vmem:[#allocation4 + $0x30] sm:$0xff] }
 0x393   : > { %2023 = vmatprep.subr.bf16.mxu0 %v2022_v17  ;;  %2096 = vmatprep.subr.bf16.mxu1 %v2022_v17  ;;  %v1011_v42 = vld [vmem:[#allocation4 + $0x60] sm:$0xff]  ;;  %v1012_v44 = vld [vmem:[#allocation4 + $0x68] sm:$0xff]  ;;  %v1013_v46 = vld [vmem:[#allocation4 + $0x70] sm:$0xff] }
 0x394   : > { %v1006_v47 = vld [vmem:[#allocation4 + $0x38] sm:$0xff]  ;;  %v1556_v49 = vld [vmem:[%s280_s26] ss:$0 sm:$0xff] }
 0x395   : > { %v1014_v48 = vld [vmem:[#allocation4 + $0x78] sm:$0xff] }
 0x396   : > { %2025 = vmatpush3.bf16.msra.mxu0 %v2022_v17  ;;  %2104 = vmatpush3.bf16.msra.mxu1 %v2022_v17 }
 0x397   : > { %2027 = vmatprep.subr.bf16.mxu0 %v2026_v22  ;;  %2097 = vmatprep.subr.bf16.mxu1 %v2026_v22 }
 0x39a   : > { %2029 = vmatpush3.bf16.msra.mxu0 %v2026_v22  ;;  %2105 = vmatpush3.bf16.msra.mxu1 %v2026_v22 }
 0x39b   : > { %2031 = vmatprep.subr.bf16.mxu0 %v2030_v25  ;;  %2098 = vmatprep.subr.bf16.mxu1 %v2030_v25 }
 0x39e   : > { %2033 = vmatpush3.bf16.msra.mxu0 %v2030_v25  ;;  %2106 = vmatpush3.bf16.msra.mxu1 %v2030_v25 }
 0x39f   : > { %2035 = vmatprep.subr.bf16.mxu0 %v2034_v28  ;;  %2099 = vmatprep.subr.bf16.mxu1 %v2034_v28 }
 0x3a2   : > { %2037 = vmatpush3.bf16.msra.mxu0 %v2034_v28  ;;  %2107 = vmatpush3.bf16.msra.mxu1 %v2034_v28 }
 0x3a3   : > { %2039 = vmatprep.subr.bf16.mxu0 %v2038_v31  ;;  %2100 = vmatprep.subr.bf16.mxu1 %v2038_v31 }
 0x3a6   : > { %2041 = vmatpush3.bf16.msra.mxu0 %v2038_v31  ;;  %2108 = vmatpush3.bf16.msra.mxu1 %v2038_v31 }
 0x3a7   : > { %2043 = vmatprep.subr.bf16.mxu0 %v2042_v34  ;;  %2101 = vmatprep.subr.bf16.mxu1 %v2042_v34 }
 0x3aa   : > { %2045 = vmatpush3.bf16.msra.mxu0 %v2042_v34  ;;  %2109 = vmatpush3.bf16.msra.mxu1 %v2042_v34 }
 0x3ad   : > { %1895 = vmatmul.mubr.f32.vlgmr.msra.gmra.mrb[0].mxu0 %v1000_v35  ;;  %1907 = vmatmul.mubr.f32.vlgmr.msra.gmra.mrb[0].mxu1 %v1008_v36 }
 0x3ae   : > { %1897 = vmatprep.mubr.f32.mxu0 %v1001_v37  ;;  %1909 = vmatprep.mubr.f32.mxu1 %v1009_v38 }
 0x3b1   : > { %1898 = vmatmul.mubr.f32.gmra.mrb[2].mxu0 %v1002_v39  ;;  %1910 = vmatmul.mubr.f32.gmra.mrb[2].mxu1 %v1010_v40 }
 0x3b2   : > { %1900 = vmatprep.mubr.f32.mxu0 %v1003_v41  ;;  %1912 = vmatprep.mubr.f32.mxu1 %v1011_v42 }
 0x3b5   : > { %1901 = vmatmul.mubr.f32.gmra.mrb[4].mxu0 %v1004_v43  ;;  %1913 = vmatmul.mubr.f32.gmra.mrb[4].mxu1 %v1012_v44 }
 0x3b6   : > { %1903 = vmatprep.mubr.f32.mxu0 %v1005_v45  ;;  %1915 = vmatprep.mubr.f32.mxu1 %v1013_v46 }
 0x3b9   : > { %1904 = vmatmul.mubr.f32.gmra.mrb[6].mxu0 %v1006_v47  ;;  %1916 = vmatmul.mubr.f32.gmra.mrb[6].mxu1 %v1014_v48 }
 0x480   : > { %v1896_v50 = vpop.f32.mrb[0].mxu0  ;;  %v1908_v51 = vpop.f32.mrb[0].mxu1 }
 0x481   : > { %v2691_v52 = vadd.f32 %v1896_v50, %v1556_v49  ;;  %v2693_v53 = vadd.f32 %v1908_v51, %v1556_v49  ;;  %v1104_v54 = vpop.f32.mrb[1].mxu0  ;;  %v1144_v55 = vpop.f32.mrb[1].mxu1 }
 0x482   : > { %v2695_v56 = vadd.f32 %v1556_v49, %v1104_v54  ;;  %v2697_v57 = vadd.f32 %v1556_v49, %v1144_v55 }
 0x483   : > { %v1189_v19 = vmax.f32 (!%p1557_p1), %v2691_v52, 0.0  ;;  %v1197_v27 = vmax.f32 (!%p1557_p1), %v2693_v53, 0.0 }
 0x484   : > { %v1899_v58 = vpop.f32.mrb[2].mxu0  ;;  %v1911_v59 = vpop.f32.mrb[2].mxu1  ;;  %v1188_v18 = vmax.f32 (!%p1557_p1), %v2695_v56, 0.0  ;;  %v1196_v26 = vmax.f32 (!%p1557_p1), %v2697_v57, 0.0 }
 0x485   : > { %v2699_v60 = vadd.f32 %v1899_v58, %v1556_v49  ;;  %v2701_v61 = vadd.f32 %v1911_v59, %v1556_v49  ;;  %v1114_v62 = vpop.f32.mrb[3].mxu0  ;;  %v1154_v63 = vpop.f32.mrb[3].mxu1 }
 0x486   : > { %v2703_v0 = vadd.f32 %v1556_v49, %v1114_v62  ;;  %v2705_v1 = vadd.f32 %v1556_v49, %v1154_v63 }
 0x487   : > { %v1191_v21 = vmax.f32 (!%p1557_p1), %v2699_v60, 0.0  ;;  %v1199_v29 = vmax.f32 (!%p1557_p1), %v2701_v61, 0.0 }
 0x488   : > { %v1902_v2 = vpop.f32.mrb[4].mxu0  ;;  %v1914_v3 = vpop.f32.mrb[4].mxu1  ;;  %1187 = sbr.rel (%p1557_p1) target bundleno = 1183 (0x49f), region = 72  ;;  %v1190_v20 = vmax.f32 (!%p1557_p1), %v2703_v0, 0.0  ;;  %v1198_v28 = vmax.f32 (!%p1557_p1), %v2705_v1, 0.0 }
 0x489   : > { %v2707_v4 = vadd.f32 %v1902_v2, %v1556_v49  ;;  %v2709_v5 = vadd.f32 %v1914_v3, %v1556_v49  ;;  %v1124_v6 = vpop.f32.mrb[5].mxu0  ;;  %v1164_v7 = vpop.f32.mrb[5].mxu1 }
 0x48a   : > { %v2711_v8 = vadd.f32 %v1556_v49, %v1124_v6  ;;  %v2713_v9 = vadd.f32 %v1556_v49, %v1164_v7 }
 0x48b   : > { %v1193_v23 = vmax.f32 (!%p1557_p1), %v2707_v4, 0.0  ;;  %v1201_v31 = vmax.f32 (!%p1557_p1), %v2709_v5, 0.0 }
 0x48c   : > { %v1905_v10 = vpop.f32.mrb[6].mxu0  ;;  %v1917_v11 = vpop.f32.mrb[6].mxu1  ;;  %v1192_v22 = vmax.f32 (!%p1557_p1), %v2711_v8, 0.0  ;;  %v1200_v30 = vmax.f32 (!%p1557_p1), %v2713_v9, 0.0 }
 0x48d   : > { %v2715_v12 = vadd.f32 %v1905_v10, %v1556_v49  ;;  %v2717_v13 = vadd.f32 %v1917_v11, %v1556_v49  ;;  %v1134_v14 = vpop.f32.mrb[7].mxu0  ;;  %v1174_v15 = vpop.f32.mrb[7].mxu1 }
 0x48e   : > { %v2719_v16 = vadd.f32 %v1556_v49, %v1134_v14  ;;  %v2721_v17 = vadd.f32 %v1556_v49, %v1174_v15 }
 0x48f   : > { %v1195_v25 = vmax.f32 %v2715_v12, 0.0  ;;  %v1203_v33 = vmax.f32 %v2717_v13, 0.0  ;;  %1206 = sbr.rel (%p1558_p2) target bundleno = 1175 (0x497), region = 76  ;;  %1208 = vst [vmem:[#allocation2] sm:$0xff] (!%p1558_p2), %v1188_v18  ;;  %1209 = vst [vmem:[#allocation2 + $0x8] sm:$0xff] (!%p1558_p2), %v1189_v19 }
 0x490   : > { %v1194_v24 = vmax.f32 %v2719_v16, 0.0  ;;  %v1202_v32 = vmax.f32 %v2721_v17, 0.0  ;;  %1210 = vst [vmem:[#allocation2 + $0x10] sm:$0xff] (!%p1558_p2), %v1190_v20  ;;  %1211 = vst [vmem:[#allocation2 + $0x18] sm:$0xff] (!%p1558_p2), %v1191_v21 }
 0x491   : > { %1212 = vst [vmem:[#allocation2 + $0x20] sm:$0xff] (!%p1558_p2), %v1192_v22  ;;  %1213 = vst [vmem:[#allocation2 + $0x28] sm:$0xff] (!%p1558_p2), %v1193_v23 }
 0x492   : > { %1214 = vst [vmem:[#allocation2 + $0x30] sm:$0xff] (!%p1558_p2), %v1194_v24  ;;  %1215 = vst [vmem:[#allocation2 + $0x38] sm:$0xff] (!%p1558_p2), %v1195_v25 }
 0x493   : > { %1216 = vst [vmem:[#allocation2 + $0x40] sm:$0xff] (!%p1558_p2), %v1196_v26  ;;  %1217 = vst [vmem:[#allocation2 + $0x48] sm:$0xff] (!%p1558_p2), %v1197_v27 }
 0x494   : > { %1218 = vst [vmem:[#allocation2 + $0x50] sm:$0xff] (!%p1558_p2), %v1198_v28  ;;  %1219 = vst [vmem:[#allocation2 + $0x58] sm:$0xff] (!%p1558_p2), %v1199_v29 }
 0x495   : > { %1220 = vst [vmem:[#allocation2 + $0x60] sm:$0xff] (!%p1558_p2), %v1200_v30  ;;  %1221 = vst [vmem:[#allocation2 + $0x68] sm:$0xff] (!%p1558_p2), %v1201_v31 }
 0x496   : > { %1222 = vst [vmem:[#allocation2 + $0x70] sm:$0xff] %v1202_v32  ;;  %1223 = vst [vmem:[#allocation2 + $0x78] sm:$0xff] %v1203_v33 }
 0x497 PF: > { %1226 = sbr.rel (%p1555_p3) target bundleno = 1183 (0x49f), region = 80  ;;  %1228 = vst [vmem:[#allocation3] sm:$0xff] (!%p1555_p3), %v1188_v18  ;;  %1229 = vst [vmem:[#allocation3 + $0x8] sm:$0xff] (!%p1555_p3), %v1189_v19 }
 0x498   : > { %1230 = vst [vmem:[#allocation3 + $0x10] sm:$0xff] (!%p1555_p3), %v1190_v20  ;;  %1231 = vst [vmem:[#allocation3 + $0x18] sm:$0xff] (!%p1555_p3), %v1191_v21 }
 0x499   : > { %1232 = vst [vmem:[#allocation3 + $0x20] sm:$0xff] (!%p1555_p3), %v1192_v22  ;;  %1233 = vst [vmem:[#allocation3 + $0x28] sm:$0xff] (!%p1555_p3), %v1193_v23 }
 0x49a   : > { %1234 = vst [vmem:[#allocation3 + $0x30] sm:$0xff] (!%p1555_p3), %v1194_v24  ;;  %1235 = vst [vmem:[#allocation3 + $0x38] sm:$0xff] (!%p1555_p3), %v1195_v25 }
 0x49b   : > { %1236 = vst [vmem:[#allocation3 + $0x40] sm:$0xff] (!%p1555_p3), %v1196_v26  ;;  %1237 = vst [vmem:[#allocation3 + $0x48] sm:$0xff] (!%p1555_p3), %v1197_v27 }
 0x49c   : > { %1238 = vst [vmem:[#allocation3 + $0x50] sm:$0xff] (!%p1555_p3), %v1198_v28  ;;  %1239 = vst [vmem:[#allocation3 + $0x58] sm:$0xff] (!%p1555_p3), %v1199_v29 }
 0x49d   : > { %1240 = vst [vmem:[#allocation3 + $0x60] sm:$0xff] (!%p1555_p3), %v1200_v30  ;;  %1241 = vst [vmem:[#allocation3 + $0x68] sm:$0xff] (!%p1555_p3), %v1201_v31 }
 0x49e   : > { %1242 = vst [vmem:[#allocation3 + $0x70] sm:$0xff] %v1202_v32  ;;  %1243 = vst [vmem:[#allocation3 + $0x78] sm:$0xff] %v1203_v33 }
 0x49f PF: > { %p1560_p8 = scmp.ne.s32.totalorder %s2428_s18, 2 }
 0x4a0   : > { %1248 = vmax.xlane.f32.xlu0 (!%p1560_p8), %v2695_v56  ;;  %1252 = vmax.xlane.f32.xlu1 (!%p1560_p8), %v2703_v0 }
 0x4a1   : > { %1247 = sbr.rel (%p1560_p8) target bundleno = 1531 (0x5fb), region = 84 }
 0x4a4   : > { %1250 = vmax.xlane.f32.xlu0 (!%p1560_p8), %v2691_v52  ;;  %1254 = vmax.xlane.f32.xlu1 (!%p1560_p8), %v2699_v60 }
 0x4a8   : > { %1256 = vmax.xlane.f32.xlu0 %v2711_v8  ;;  %1258 = vmax.xlane.f32.xlu1 %v2707_v4 }
 0x4ac   : > { %1260 = vmax.xlane.f32.xlu0 %v2719_v16  ;;  %1262 = vmax.xlane.f32.xlu1 %v2715_v12 }
 0x4b0   : > { %1264 = vmax.xlane.f32.xlu0 %v2697_v57  ;;  %1266 = vmax.xlane.f32.xlu1 %v2693_v53 }
 0x4b4   : > { %1268 = vmax.xlane.f32.xlu0 %v2705_v1  ;;  %1270 = vmax.xlane.f32.xlu1 %v2701_v61 }
 0x4b8   : > { %1272 = vmax.xlane.f32.xlu0 %v2713_v9  ;;  %1274 = vmax.xlane.f32.xlu1 %v2709_v5 }
 0x4bc   : > { %1276 = vmax.xlane.f32.xlu0 %v2721_v17  ;;  %1278 = vmax.xlane.f32.xlu1 %v2717_v13 }
 0x52d   : > { %v1249_v34 = vpop.xlane.xlu0 %1248  ;;  %v1253_v35 = vpop.xlane.xlu1 %1252 }
 0x52e   : > { %v2761_v36 = vsub.f32 %v2695_v56, %v1249_v34  ;;  %v2764_v37 = vsub.f32 %v2703_v0, %v1253_v35 }
 0x530   : > { %v1296_v38 = vmul.f32 1.442695, %v2761_v36  ;;  %v1300_v39 = vmul.f32 1.442695, %v2764_v37 }
 0x531   : > { %v1251_v40 = vpop.xlane.xlu0 %1250  ;;  %v1255_v41 = vpop.xlane.xlu1 %1254 }
 0x532   : > { %2198 = vpow2.f32 %v1296_v38  ;;  %v2769_v42 = vsub.f32 %v2691_v52, %v1251_v40  ;;  %v2772_v43 = vsub.f32 %v2699_v60, %v1255_v41 }
 0x533   : > { %2200 = vpow2.f32 %v1300_v39 }
 0x534   : > { %v1298_v44 = vmul.f32 1.442695, %v2769_v42  ;;  %v1302_v45 = vmul.f32 1.442695, %v2772_v43 }
 0x535   : > { %v1257_v46 = vpop.xlane.xlu0 %1256  ;;  %v1259_v47 = vpop.xlane.xlu1 %1258 }
 0x536   : > { %2202 = vpow2.f32 %v1298_v44  ;;  %v2777_v48 = vsub.f32 %v2711_v8, %v1257_v46  ;;  %v2780_v49 = vsub.f32 %v2707_v4, %v1259_v47 }
 0x537   : > { %2204 = vpow2.f32 %v1302_v45 }
 0x538   : > { %v1304_v50 = vmul.f32 1.442695, %v2777_v48  ;;  %v1306_v51 = vmul.f32 1.442695, %v2780_v49 }
 0x539   : > { %v1261_v52 = vpop.xlane.xlu0 %1260  ;;  %v1263_v54 = vpop.xlane.xlu1 %1262 }
 0x53a   : > { %2206 = vpow2.f32 %v1304_v50  ;;  %v2785_v55 = vsub.f32 %v2719_v16, %v1261_v52  ;;  %v2788_v56 = vsub.f32 %v2715_v12, %v1263_v54 }
 0x53b   : > { %2208 = vpow2.f32 %v1306_v51 }
 0x53c   : > { %v2199_v58 = vpop.eup %2198  ;;  %v1308_v59 = vmul.f32 1.442695, %v2785_v55  ;;  %v1310_v60 = vmul.f32 1.442695, %v2788_v56 }
 0x53d   : > { %1328 = vadd.xlane.f32.xlu0 %v2199_v58  ;;  %v1265_v62 = vpop.xlane.xlu0 %1264  ;;  %v1267_v63 = vpop.xlane.xlu1 %1266 }
 0x53e   : > { %v2201_v0 = vpop.eup %2200  ;;  %2210 = vpow2.f32 %v1308_v59  ;;  %v2793_v2 = vsub.f32 %v2697_v57, %v1265_v62  ;;  %v2796_v3 = vsub.f32 %v2693_v53, %v1267_v63 }
 0x53f   : > { %2212 = vpow2.f32 %v1310_v60 }
 0x540   : > { %v2203_v4 = vpop.eup %2202  ;;  %v1312_v6 = vmul.f32 1.442695, %v2793_v2  ;;  %v1314_v7 = vmul.f32 1.442695, %v2796_v3 }
 0x541   : > { %1332 = vadd.xlane.f32.xlu0 %v2201_v0  ;;  %1330 = vadd.xlane.f32.xlu1 %v2203_v4  ;;  %v1269_v8 = vpop.xlane.xlu0 %1268  ;;  %v1271_v10 = vpop.xlane.xlu1 %1270 }
 0x542   : > { %v2205_v11 = vpop.eup %2204  ;;  %2214 = vpow2.f32 %v1312_v6  ;;  %v2801_v12 = vsub.f32 %v2705_v1, %v1269_v8  ;;  %v2804_v57 = vsub.f32 %v2701_v61, %v1271_v10 }
 0x543   : > { %2216 = vpow2.f32 %v1314_v7 }
 0x544   : > { %v2207_v53 = vpop.eup %2206  ;;  %v1316_v14 = vmul.f32 1.442695, %v2801_v12  ;;  %v1318_v15 = vmul.f32 1.442695, %v2804_v57 }
 0x545   : > { %1334 = vadd.xlane.f32.xlu1 %v2205_v11  ;;  %1336 = vadd.xlane.f32.xlu0 %v2207_v53  ;;  %v1273_v16 = vpop.xlane.xlu0 %1272  ;;  %v1275_v18 = vpop.xlane.xlu1 %1274 }
 0x546   : > { %v2209_v19 = vpop.eup %2208  ;;  %2218 = vpow2.f32 %v1316_v14  ;;  %v2809_v20 = vsub.f32 %v2713_v9, %v1273_v16  ;;  %v2812_v1 = vsub.f32 %v2709_v5, %v1275_v18 }
 0x547   : > { %2220 = vpow2.f32 %v1318_v15 }
 0x548   : > { %v2211_v61 = vpop.eup %2210  ;;  %v1320_v21 = vmul.f32 1.442695, %v2809_v20  ;;  %v1322_v22 = vmul.f32 1.442695, %v2812_v1 }
 0x549   : > { %1338 = vadd.xlane.f32.xlu1 %v2209_v19  ;;  %1340 = vadd.xlane.f32.xlu0 %v2211_v61  ;;  %v1277_v23 = vpop.xlane.xlu0 %1276  ;;  %v1279_v24 = vpop.xlane.xlu1 %1278 }
 0x54a   : > { %v2213_v25 = vpop.eup %2212  ;;  %2222 = vpow2.f32 %v1320_v21  ;;  %v2817_v26 = vsub.f32 %v2721_v17, %v1277_v23  ;;  %v2820_v9 = vsub.f32 %v2717_v13, %v1279_v24 }
 0x54b   : > { %2224 = vpow2.f32 %v1322_v22 }
 0x54c   : > { %v2215_v5 = vpop.eup %2214  ;;  %v1324_v27 = vmul.f32 1.442695, %v2817_v26  ;;  %v1326_v28 = vmul.f32 1.442695, %v2820_v9 }
 0x54d   : > { %1342 = vadd.xlane.f32.xlu1 %v2213_v25  ;;  %1344 = vadd.xlane.f32.xlu0 %v2215_v5  ;;  %v2217_v29 = vpop.eup %2216 }
 0x54e   : > { %2226 = vpow2.f32 %v1324_v27 }
 0x54f   : > { %2228 = vpow2.f32 %v1326_v28 }
 0x550   : > { %v2219_v30 = vpop.eup %2218 }
 0x551   : > { %1346 = vadd.xlane.f32.xlu1 %v2217_v29  ;;  %1348 = vadd.xlane.f32.xlu0 %v2219_v30  ;;  %v2221_v31 = vpop.eup %2220 }
 0x554   : > { %v2223_v17 = vpop.eup %2222 }
 0x555   : > { %1350 = vadd.xlane.f32.xlu1 %v2221_v31  ;;  %1352 = vadd.xlane.f32.xlu0 %v2223_v17  ;;  %v2225_v13 = vpop.eup %2224 }
 0x558   : > { %v2227_v32 = vpop.eup %2226 }
 0x559   : > { %1354 = vadd.xlane.f32.xlu1 %v2225_v13  ;;  %1356 = vadd.xlane.f32.xlu0 %v2227_v32  ;;  %v2229_v33 = vpop.eup %2228 }
 0x55d   : > { %1358 = vadd.xlane.f32.xlu1 %v2229_v33 }
 0x5ca   : > { %v1329_v34 = vpop.xlane.xlu0 %1328 }
 0x5cb   : > { %2230 = vlog2.f32 %v1329_v34 }
 0x5ce   : > { %v1331_v35 = vpop.xlane.xlu1 %1330  ;;  %v1333_v38 = vpop.xlane.xlu0 %1332 }
 0x5cf   : > { %2232 = vlog2.f32 %v1331_v35 }
 0x5d0   : > { %2234 = vlog2.f32 %v1333_v38 }
 0x5d2   : > { %v1335_v39 = vpop.xlane.xlu1 %1334  ;;  %v1337_v40 = vpop.xlane.xlu0 %1336 }
 0x5d3   : > { %2236 = vlog2.f32 %v1335_v39 }
 0x5d4   : > { %2238 = vlog2.f32 %v1337_v40 }
 0x5d5   : > { %v2231_v41 = vpop.eup %2230 }
 0x5d6   : > { %v1361_v44 = vmul.f32 0.6931472, %v2231_v41  ;;  %v1339_v45 = vpop.xlane.xlu1 %1338  ;;  %v1341_v46 = vpop.xlane.xlu0 %1340 }
 0x5d7   : > { %2240 = vlog2.f32 %v1339_v45 }
 0x5d8   : > { %v1392_v47 = vsub.f32 %v2761_v36, %v1361_v44  ;;  %2242 = vlog2.f32 %v1341_v46 }
 0x5d9   : > { %v2233_v50 = vpop.eup %2232 }
 0x5da   : > { %v2235_v51 = vpop.eup %2234  ;;  %1408 = vst [vmem:[#allocation11] sm:$0xff] %v1392_v47  ;;  %v1363_v52 = vmul.f32 0.6931472, %v2233_v50  ;;  %v1343_v54 = vpop.xlane.xlu1 %1342 }
 0x5db   : > { %v1345_v58 = vpop.xlane.xlu0 %1344  ;;  %v1365_v59 = vmul.f32 0.6931472, %v2235_v51  ;;  %2244 = vlog2.f32 %v1343_v54 }
 0x5dc   : > { %v1393_v60 = vsub.f32 %v2769_v42, %v1363_v52  ;;  %2246 = vlog2.f32 %v1345_v58 }
 0x5dd   : > { %v2237_v62 = vpop.eup %2236  ;;  %v1394_v63 = vsub.f32 %v2764_v37, %v1365_v59 }
 0x5de   : > { %v2239_v0 = vpop.eup %2238  ;;  %1409 = vst [vmem:[#allocation11 + $0x8] sm:$0xff] %v1393_v60  ;;  %v1367_v4 = vmul.f32 0.6931472, %v2237_v62  ;;  %v1347_v6 = vpop.xlane.xlu1 %1346 }
 0x5df   : > { %v1349_v36 = vpop.xlane.xlu0 %1348  ;;  %1410 = vst [vmem:[#allocation11 + $0x10] sm:$0xff] %v1394_v63  ;;  %v1369_v7 = vmul.f32 0.6931472, %v2239_v0  ;;  %2248 = vlog2.f32 %v1347_v6 }
 0x5e0   : > { %v1395_v8 = vsub.f32 %v2772_v43, %v1367_v4  ;;  %2250 = vlog2.f32 %v1349_v36 }
 0x5e1   : > { %v2241_v10 = vpop.eup %2240  ;;  %v1396_v11 = vsub.f32 %v2777_v48, %v1369_v7 }
 0x5e2   : > { %v2243_v53 = vpop.eup %2242  ;;  %1411 = vst [vmem:[#allocation11 + $0x18] sm:$0xff] %v1395_v8  ;;  %v1371_v42 = vmul.f32 0.6931472, %v2241_v10  ;;  %v1351_v14 = vpop.xlane.xlu1 %1350 }
 0x5e3   : > { %v1353_v15 = vpop.xlane.xlu0 %1352  ;;  %1412 = vst [vmem:[#allocation11 + $0x20] sm:$0xff] %v1396_v11  ;;  %v1373_v37 = vmul.f32 0.6931472, %v2243_v53  ;;  %2252 = vlog2.f32 %v1351_v14 }
 0x5e4   : > { %v1397_v16 = vsub.f32 %v2780_v49, %v1371_v42  ;;  %2254 = vlog2.f32 %v1353_v15 }
 0x5e5   : > { %v2245_v18 = vpop.eup %2244  ;;  %v1398_v19 = vsub.f32 %v2785_v55, %v1373_v37 }
 0x5e6   : > { %v2247_v61 = vpop.eup %2246  ;;  %1413 = vst [vmem:[#allocation11 + $0x28] sm:$0xff] %v1397_v16  ;;  %v1375_v43 = vmul.f32 0.6931472, %v2245_v18  ;;  %v1355_v21 = vpop.xlane.xlu1 %1354 }
 0x5e7   : > { %v1357_v22 = vpop.xlane.xlu0 %1356  ;;  %1414 = vst [vmem:[#allocation11 + $0x30] sm:$0xff] %v1398_v19  ;;  %v1377_v48 = vmul.f32 0.6931472, %v2247_v61  ;;  %2256 = vlog2.f32 %v1355_v21 }
 0x5e8   : > { %v1399_v23 = vsub.f32 %v2788_v56, %v1375_v43  ;;  %2258 = vlog2.f32 %v1357_v22 }
 0x5e9   : > { %v2249_v24 = vpop.eup %2248  ;;  %v1400_v25 = vsub.f32 %v2793_v2, %v1377_v48 }
 0x5ea   : > { %v2251_v5 = vpop.eup %2250  ;;  %1415 = vst [vmem:[#allocation11 + $0x38] sm:$0xff] %v1399_v23  ;;  %v1379_v49 = vmul.f32 0.6931472, %v2249_v24  ;;  %v1359_v27 = vpop.xlane.xlu1 %1358 }
 0x5eb   : > { %1416 = vst [vmem:[#allocation11 + $0x40] sm:$0xff] %v1400_v25  ;;  %v1381_v55 = vmul.f32 0.6931472, %v2251_v5  ;;  %2260 = vlog2.f32 %v1359_v27 }
 0x5ec   : > { %v1401_v28 = vsub.f32 %v2796_v3, %v1379_v49 }
 0x5ed   : > { %v2253_v29 = vpop.eup %2252  ;;  %v1402_v30 = vsub.f32 %v2801_v12, %v1381_v55 }
 0x5ee   : > { %v2255_v31 = vpop.eup %2254  ;;  %1417 = vst [vmem:[#allocation11 + $0x48] sm:$0xff] %v1401_v28  ;;  %v1383_v17 = vmul.f32 0.6931472, %v2253_v29 }
 0x5ef   : > { %1418 = vst [vmem:[#allocation11 + $0x50] sm:$0xff] %v1402_v30  ;;  %v1385_v56 = vmul.f32 0.6931472, %v2255_v31 }
 0x5f0   : > { %v1403_v13 = vsub.f32 %v2804_v57, %v1383_v17 }
 0x5f1   : > { %v2257_v2 = vpop.eup %2256  ;;  %v1404_v32 = vsub.f32 %v2809_v20, %v1385_v56 }
 0x5f2   : > { %v2259_v33 = vpop.eup %2258  ;;  %1419 = vst [vmem:[#allocation11 + $0x58] sm:$0xff] %v1403_v13  ;;  %v1387_v34 = vmul.f32 0.6931472, %v2257_v2 }
 0x5f3   : > { %1420 = vst [vmem:[#allocation11 + $0x60] sm:$0xff] %v1404_v32  ;;  %v1389_v35 = vmul.f32 0.6931472, %v2259_v33 }
 0x5f4   : > { %v1405_v3 = vsub.f32 %v2812_v1, %v1387_v34 }
 0x5f5   : > { %v2261_v38 = vpop.eup %2260  ;;  %v1406_v12 = vsub.f32 %v2817_v26, %v1389_v35 }
 0x5f6   : > { %1421 = vst [vmem:[#allocation11 + $0x68] sm:$0xff] %v1405_v3  ;;  %v1391_v39 = vmul.f32 0.6931472, %v2261_v38 }
 0x5f7   : > { %1422 = vst [vmem:[#allocation11 + $0x70] sm:$0xff] %v1406_v12 }
 0x5f8   : > { %v1407_v40 = vsub.f32 %v2820_v9, %v1391_v39 }
 0x5fa   : > { %1423 = vst [vmem:[#allocation11 + $0x78] sm:$0xff] %v1407_v40 }
 0x5fb PF: > { %p2140_p13 = scmp.eq.s32.totalorder %s2501_s21, 2  ;;  %s2444_s18 = smov [#allocation11]  }
 0x5fc   : > { %s1433_s24 = sshll.u32 %s2444_s18, 4  ;;  %s1434_s24 = int_to_ptr.vmem [resolvable:$true] %s1433_s24 }
 0x5fd   : > { %s2348_s30 = scalar_lea.vmem %s1434_s24, 2048  ;;  %p2355_p7 = scmp.lt.s32.totalorder %s1434_s24, %s1434_s24 }
 0x5fe   : > { %p2349_p4 = scmp.ne.s32.totalorder %s1434_s24, %s2348_s30  ;;  %p2356_p9 = scmp.lt.s32.totalorder %s2348_s30, %s2348_s30 }
 0x600   : > { %p2350_p5 = pnand %p2349_p4, %p2140_p13  ;;  %p2357_p11 = por %p2356_p9, %p2355_p7 }
 0x602   : > { %p2351_p6 = pneg %p2350_p5 }
 0x604   : > { %p2358_p0 = pnand %p2357_p11, %p2351_p6 }
 0x606   : > { %2361 = shalt.err (!%p2358_p0)
}
 0x607   : > { %s2362_s5 = scalar_lea.hbm %s2885_s4, 2048 }
 0x608   : > { %p2363_p3 = scmp.ne.s32.totalorder %s2885_s4, %s2362_s5  ;;  %p2368_p1 = scmp.lt.u32.totalorder %s2362_s5, %s2885_s4 }
 0x60a   : > { %p2364_p10 = pnand %p2363_p3, %p2140_p13 }
 0x60c   : > { %p2365_p12 = pneg %p2364_p10 }
 0x60e   : > { %p2370_p2 = pnand %p2368_p1, %p2365_p12 }
 0x610   : > { %2373 = shalt.err (!%p2370_p2)
}
 0x611   : > { %s2445_s23 = smov 128   ;;  %s2446_s6 = smov 8  }
 0x612   : > { %2121 = dma.vmem_to_hbm [thread:$0]  (%p2140_p13), %s1434_s24, 2048, %s2885_s4, [#allocation7], %s2445_s23, %s2445_s23, %s2446_s6  }
 0x613   : > { %2411 = dma.done.wait (%p2140_p13), [#allocation7], 2048  }
 0x614   : > { %2413 = vsyncadd (%p2140_p13), [#allocation7], 4294965248 }
 0x615 PF: > { %s17_s20 = sadd.s32 1, %s2436_s20   ;;  %s2901_s15 = smov %s2420_s16 }
 0x616   : > { %p14_p8 = scmp.ge.s32.totalorder %s17_s20, 5   ;;  %s2902_s16 = smov %s2424_s17 }
 0x617   : > { %s2903_s17 = smov %s2596_s25  ;;  %s2904_s18 = smov %s2432_s19 }
 0x618   : > { %s2905_s19 = smov %s2907_s12  ;;  %16 = sbr.rel (!%p14_p8) target bundleno = 5 (0x5), region = 126 }
 0x61f   :  { %1449 = vsyncpa [#allocation6], 1 }
 0x620   :  { %1451 = vsyncpa [#allocation6 + $0x1], 1 }
 0x621   :  { %1452 = vsyncpa [#allocation9], 1 }
 0x622   :  { %1453 = vsyncpa [#allocation7], 1 }
 0x623   :  { %1455 = vsyncpa [#allocation7 + $0x1], 1 }

</bundles_post_ra>
